<compile_context>
chip_gen: v7x
topology: tpu7x:2x2x1
jax: 0.10.0
libtpu: 0.0.40
codegen_flags: <defaults>
</compile_context>

<pallas_src>
import functools

import numpy as np
import jax
import jax.numpy as jnp
from jax.experimental import pallas as pl
from jax.experimental.pallas import tpu as pltpu

EMBED_DIM = 128    # stands in for 4096 in the reference module (lane-aligned)
NUM_HEADS = 4      # stands in for 8
HIDDEN_DIM = 128   # stands in for 2048
GUMBEL_TAU = 1.0

# tile preferences (safe for v5e/v6e/v7x scoped-VMEM defaults with 2x buffering)
M_BLOCK = 256
N_BLOCK = 512
K_BLOCK = 512


# ---------------------------------------------------------------------------
# small shape helpers
# ---------------------------------------------------------------------------
def _round_up(n, m):
    return ((n + m - 1) // m) * m


def _pad_block(dim, pref, align):
    """Return (padded_dim, block) s.t. padded_dim % block == 0 and the block is
    either `pref` (>= pref case) or the full (align-rounded) dim."""
    if dim >= pref:
        return _round_up(dim, pref), pref
    p = _round_up(dim, align)
    return p, p


def _pad2(x, rows, cols):
    r, c = x.shape
    if r == rows and c == cols:
        return x
    return jnp.pad(x, ((0, rows - r), (0, cols - c)))


def _mask_to_bias(mask):
    """bool (L,) -> additive f32 (1, L) bias: 0 for valid, -1e30 for invalid."""
    return jnp.where(mask, 0.0, -1e30).astype(jnp.float32)[None, :]


# ---------------------------------------------------------------------------
# Pallas kernels
# ---------------------------------------------------------------------------
def _linear_kernel(x_ref, w_ref, b_ref, o_ref, acc_ref, *, activation):
    """Tiled y = act(x @ w + b); bf16 operands, f32 accumulation."""
    k = pl.program_id(2)

    @pl.when(k == 0)
    def _():
        acc_ref[...] = jnp.zeros_like(acc_ref)

    acc_ref[...] += jnp.dot(x_ref[...], w_ref[...],
                            preferred_element_type=jnp.float32)

    @pl.when(k == pl.num_programs(2) - 1)
    def _():
        y = acc_ref[...] + b_ref[...]
        if activation == "relu":
            y = jnp.maximum(y, 0.0)
        o_ref[...] = y.astype(o_ref.dtype)


def _attn_core_kernel(q_ref, k_ref, v_ref, bias_ref, o_ref, *, scale):
    """One (head, q-block): softmax(q k^T * scale + bias) @ v."""
    q = q_ref[...]                      # (bq, dh) bf16
    k = k_ref[...]                      # (lk, dh) bf16
    v = v_ref[...]                      # (lk, dh) bf16
    s = jax.lax.dot_general(q, k, (((1,), (1,)), ((), ())),
                            preferred_element_type=jnp.float32)     # (bq, lk)
    s = s * scale + bias_ref[...]
    m = jnp.max(s, axis=-1, keepdims=True)
    p = jnp.exp(s - m)
    inv = pl.reciprocal(jnp.sum(p, axis=-1, keepdims=True), approx=True)
    p = (p * inv).astype(v.dtype)
    o_ref[...] = jnp.dot(p, v, preferred_element_type=jnp.float32
                         ).astype(o_ref.dtype)


def _mlp_head_kernel(h_ref, w2_ref, b2_ref, o_ref):
    """Second MLP layer (out_dim = 1) as a VPU multiply-reduce."""
    o_ref[...] = (jnp.sum(h_ref[...] * w2_ref[...], axis=-1, keepdims=True)
                  + b2_ref[...])


def _merge_kernel(xr_ref, rw_ref, xs16_ref, xs32_ref, colb_ref, sn_ref, isn_ref,
                  o_ref, cnt_sc, sum_sc, mxn_sc):
    """R-blocked accumulating best-match merge of remaining tokens into selected."""
    i = pl.program_id(0)
    n_sel = colb_ref.shape[-1]

    @pl.when(i == 0)
    def _():
        cnt_sc[...] = jnp.zeros_like(cnt_sc)
        sum_sc[...] = jnp.zeros_like(sum_sc)
        mxn_sc[...] = jnp.full_like(mxn_sc, -1e30)

    xr = xr_ref[...]                                          # (br, D) f32
    rw = rw_ref[...]                                          # (br, 1) 1=remaining
    rn = jnp.sqrt(jnp.sum(xr * xr, axis=-1, keepdims=True))   # (br, 1)
    inv_rn = pl.reciprocal(jnp.maximum(rn, 1e-8))

    dots = jax.lax.dot_general(xr.astype(jnp.bfloat16), xs16_ref[...],
                               (((1,), (1,)), ((), ())),
                               preferred_element_type=jnp.float32)   # (br, L)
    cos = dots * inv_rn * isn_ref[...] + colb_ref[...]               # mask non-sel cols

    row_max = jnp.max(cos, axis=-1, keepdims=True)
    col_idx = jax.lax.broadcasted_iota(jnp.int32, cos.shape, 1)
    cand = jnp.where(cos >= row_max, col_idx, n_sel)
    best = jnp.min(cand, axis=-1, keepdims=True)                     # first argmax
    assign = jnp.where(col_idx == best, 1.0, 0.0) * rw               # (br, L)

    cnt_sc[...] += jnp.sum(assign, axis=0, keepdims=True)            # (1, L)
    sum_sc[...] += jax.lax.dot_general(assign, xr, (((0,), (0,)), ((), ())),
                                       preferred_element_type=jnp.float32)
    mxn_sc[...] = jnp.maximum(
        mxn_sc[...],
        jnp.max(jnp.where(assign > 0.0, rn, -1e30), axis=0, keepdims=True))

    @pl.when(i == pl.num_programs(0) - 1)
    def _():
        xs = xs32_ref[...]                                           # (L, D) f32
        counts = cnt_sc[...].T                                       # (L, 1)
        token_mean = (xs + sum_sc[...]) * pl.reciprocal(1.0 + counts)
        max_norm = jnp.maximum(sn_ref[...], mxn_sc[...]).T           # (L, 1)
        mean_norm = jnp.sqrt(jnp.sum(token_mean * token_mean,
                                     axis=-1, keepdims=True))
        updated = token_mean * pl.reciprocal(mean_norm, approx=True) * max_norm
        o_ref[...] = jnp.where(counts > 0.0, updated, xs)


# ---------------------------------------------------------------------------
# Pallas wrappers
# ---------------------------------------------------------------------------
def linear_forward(x, w, b, *, activation=None, out_dtype=jnp.float32):
    """y = act(x @ w + b); w is pre-transposed (in, out), stored bf16."""
    m, k = x.shape
    _, n = w.shape
    mp, bm = _pad_block(m, M_BLOCK, 8)
    kp, bk = _pad_block(k, K_BLOCK, 128)
    np_, bn = _pad_block(n, N_BLOCK, 128)

    xp = _pad2(x.astype(jnp.bfloat16), mp, kp)
    wp = _pad2(w.astype(jnp.bfloat16), kp, np_)
    bp = _pad2(b.astype(jnp.float32), 1, np_)

    out = pl.pallas_call(
        functools.partial(_linear_kernel, activation=activation),
        out_shape=jax.ShapeDtypeStruct((mp, np_), out_dtype),
        grid_spec=pltpu.PrefetchScalarGridSpec(
            num_scalar_prefetch=0,
            grid=(mp // bm, np_ // bn, kp // bk),
            in_specs=[
                pl.BlockSpec((bm, bk), lambda i, j, kk: (i, kk)),
                pl.BlockSpec((bk, bn), lambda i, j, kk: (kk, j)),
                pl.BlockSpec((1, bn), lambda i, j, kk: (0, j)),
            ],
            out_specs=pl.BlockSpec((bm, bn), lambda i, j, kk: (i, j)),
            scratch_shapes=[pltpu.VMEM((bm, bn), jnp.float32)],
        ),
        compiler_params=pltpu.CompilerParams(
            dimension_semantics=("parallel", "parallel", "arbitrary")),
    )(xp, wp, bp)
    return out[:m, :n]


def mha_forward(p, query, keyval, kv_bias, *, num_heads):
    """Cross attention: query (Lq, D), key/value (Lk, D), additive kv_bias (1, Lk)."""
    lq, d = query.shape
    lk, _ = keyval.shape
    dh = d // num_heads
    scale = 1.0 / float(np.sqrt(dh))

    q = linear_forward(query, p["wq"], p["bq"], out_dtype=jnp.bfloat16)
    kv = linear_forward(keyval, p["wkv"], p["bkv"], out_dtype=jnp.bfloat16)
    k = kv[:, :d]
    v = kv[:, d:]

    lqp, bq = _pad_block(lq, M_BLOCK, 8)
    if lqp != lq:
        q = jnp.pad(q, ((0, lqp - lq), (0, 0)))

    qh = q.reshape(lqp, num_heads, dh).transpose(1, 0, 2)
    kh = k.reshape(lk, num_heads, dh).transpose(1, 0, 2)
    vh = v.reshape(lk, num_heads, dh).transpose(1, 0, 2)

    out_h = pl.pallas_call(
        functools.partial(_attn_core_kernel, scale=scale),
        out_shape=jax.ShapeDtypeStruct((num_heads, lqp, dh), jnp.bfloat16),
        grid_spec=pltpu.PrefetchScalarGridSpec(
            num_scalar_prefetch=0,
            grid=(num_heads, lqp // bq),
            in_specs=[
                pl.BlockSpec((None, bq, dh), lambda h, i: (h, i, 0)),
                pl.BlockSpec((None, lk, dh), lambda h, i: (h, 0, 0)),
                pl.BlockSpec((None, lk, dh), lambda h, i: (h, 0, 0)),
                pl.BlockSpec((1, lk), lambda h, i: (0, 0)),
            ],
            out_specs=pl.BlockSpec((None, bq, dh), lambda h, i: (h, i, 0)),
        ),
        compiler_params=pltpu.CompilerParams(
            dimension_semantics=("parallel", "parallel")),
    )(qh, kh, vh, kv_bias)

    attn = out_h.transpose(1, 0, 2).reshape(lqp, d)[:lq]
    return linear_forward(attn, p["wo"], p["bo"], out_dtype=jnp.float32)


def mlp_head_forward(h, w2_row, b2):
    """logits = sum(h * w2_row, -1) + b2 ; h is the relu'd hidden activations."""
    m, hd = h.shape
    mp, bm = _pad_block(m, M_BLOCK, 8)
    hdp = _round_up(hd, 128)
    hp = _pad2(h.astype(jnp.float32), mp, hdp)
    w2p = _pad2(w2_row.astype(jnp.float32), 1, hdp)

    out = pl.pallas_call(
        _mlp_head_kernel,
        out_shape=jax.ShapeDtypeStruct((mp, 1), jnp.float32),
        grid_spec=pltpu.PrefetchScalarGridSpec(
            num_scalar_prefetch=0,
            grid=(mp // bm,),
            in_specs=[
                pl.BlockSpec((bm, hdp), lambda i: (i, 0)),
                pl.BlockSpec((1, hdp), lambda i: (0, 0)),
                pl.BlockSpec((1, 1), lambda i: (0, 0)),
            ],
            out_specs=pl.BlockSpec((bm, 1), lambda i: (i, 0)),
        ),
        compiler_params=pltpu.CompilerParams(dimension_semantics=("parallel",)),
    )(hp, w2p, b2)
    return out[:m, 0]


def merge_forward(x_pad, sel_mask, valid_mask):
    """Merge remaining (valid & not selected) tokens into best-cos-sim selected ones.

    Fixed-shape, R-blocked accumulation; returns full (L, D) features where
    selected positions are updated and every other row is passed through.
    """
    l, d = x_pad.shape
    lp, br = _pad_block(l, M_BLOCK, 8)
    if lp != l:
        x_pad = jnp.pad(x_pad, ((0, lp - l), (0, 0)))
        sel_mask = jnp.pad(sel_mask, (0, lp - l))
        valid_mask = jnp.pad(valid_mask, (0, lp - l))

    xf = x_pad.astype(jnp.float32)
    rem = jnp.logical_and(valid_mask, jnp.logical_not(sel_mask))
    rw = rem.astype(jnp.float32)[:, None]                              # (L, 1)
    col_bias = jnp.where(sel_mask, 0.0, -1e30).astype(jnp.float32)[None, :]
    norms = jnp.sqrt(jnp.sum(xf * xf, axis=-1))
    sn = norms[None, :].astype(jnp.float32)                            # (1, L)
    isn = (1.0 / jnp.maximum(norms, 1e-8))[None, :].astype(jnp.float32)
    xs16 = xf.astype(jnp.bfloat16)

    out = pl.pallas_call(
        _merge_kernel,
        out_shape=jax.ShapeDtypeStruct((lp, d), jnp.float32),
        grid_spec=pltpu.PrefetchScalarGridSpec(
            num_scalar_prefetch=0,
            grid=(lp // br,),
            in_specs=[
                pl.BlockSpec((br, d), lambda i: (i, 0)),   # remaining block (f32)
                pl.BlockSpec((br, 1), lambda i: (i, 0)),   # remaining weight
                pl.BlockSpec((lp, d), lambda i: (0, 0)),   # selected-side (bf16)
                pl.BlockSpec((lp, d), lambda i: (0, 0)),   # selected-side (f32)
                pl.BlockSpec((1, lp), lambda i: (0, 0)),   # column bias
                pl.BlockSpec((1, lp), lambda i: (0, 0)),   # selected norms
                pl.BlockSpec((1, lp), lambda i: (0, 0)),   # inv selected norms
            ],
            out_specs=pl.BlockSpec((lp, d), lambda i: (0, 0)),
            scratch_shapes=[pltpu.VMEM((1, lp), jnp.float32),    # counts
                            pltpu.VMEM((lp, d), jnp.float32),    # sum of assigned
                            pltpu.VMEM((1, lp), jnp.float32)],   # max assigned norm
        ),
        compiler_params=pltpu.CompilerParams(dimension_semantics=("arbitrary",)),
    )(xf, rw, xs16, xf, col_bias, sn, isn)
    return out[:l]


# ---------------------------------------------------------------------------
# Parameter init (deterministic, in-script; weights pre-transposed, bf16)
# ---------------------------------------------------------------------------
def _init_linear_t(key, in_dim, out_dim, scale=0.05):
    kw, kb = jax.random.split(key)
    w = (scale * jax.random.normal(kw, (in_dim, out_dim), jnp.float32)
         ).astype(jnp.bfloat16)
    b = scale * jax.random.normal(kb, (1, out_dim), jnp.float32)
    return w, b


def init_mha_params(key, d=EMBED_DIM):
    ks = jax.random.split(key, 4)
    wq, bq = _init_linear_t(ks[0], d, d)
    wk, bk = _init_linear_t(ks[1], d, d)
    wv, bv = _init_linear_t(ks[2], d, d)
    wo, bo = _init_linear_t(ks[3], d, d)
    return dict(wq=wq, bq=bq,
                wkv=jnp.concatenate([wk, wv], axis=1),    # fused K/V projection
                bkv=jnp.concatenate([bk, bv], axis=1),
                wo=wo, bo=bo)


def init_tsm_params(key):
    k1, k2, k3, k4, k5 = jax.random.split(key, 5)
    w1, b1 = _init_linear_t(k3, EMBED_DIM, HIDDEN_DIM)
    w2 = 0.05 * jax.random.normal(k4, (1, HIDDEN_DIM), jnp.float32)
    b2 = 0.05 * jax.random.normal(k5, (1, 1), jnp.float32)
    return {"global": init_mha_params(k1),
            "local": init_mha_params(k2),
            "mlp": dict(w1=w1, b1=b1, w2=w2, b2=b2)}


def init_router_params(key):
    k1, k2 = jax.random.split(key)
    return {"selector": {"m1": init_tsm_params(k1), "m2": init_tsm_params(k2)}}


# ---------------------------------------------------------------------------
# Module forward (fixed-shape, mask-based; all hot paths in Pallas)
# ---------------------------------------------------------------------------
def token_selection(p, query_feat, query_mask, kv_feat, kv_bias,
                    text_feat, text_bias, key):
    """TokenSelectionModule.forward, training path (gumbel hard selection)."""
    gfeat = mha_forward(p["global"], query_feat, kv_feat, kv_bias,
                        num_heads=NUM_HEADS)
    lfeat = mha_forward(p["local"], query_feat, text_feat, text_bias,
                        num_heads=NUM_HEADS) + query_feat

    lq = query_feat.shape[0]
    x2 = jnp.concatenate([lfeat, gfeat], axis=0)                 # (2L, D)
    h = linear_forward(x2, p["mlp"]["w1"], p["mlp"]["b1"],
                       activation="relu", out_dtype=jnp.float32)
    logits = mlp_head_forward(h, p["mlp"]["w2"], p["mlp"]["b2"])  # (2L,)
    logit_local = logits[:lq]
    logit_global = logits[lq:]

    # F.gumbel_softmax(tau=1, hard=True): token selected iff "global" channel
    # wins the noisy argmax.
    g = jax.random.gumbel(key, (lq, 2), dtype=jnp.float32)
    sel = ((logit_global + g[:, 1]) / GUMBEL_TAU
           > (logit_local + g[:, 0]) / GUMBEL_TAU)
    return jnp.logical_and(sel, query_mask)


def stacked_selection(p, vision_pad, vision_valid, text_pad, text_valid, key):
    k1, k2 = jax.random.split(key)
    combined = jnp.concatenate([vision_pad, text_pad], axis=0)
    text_bias = _mask_to_bias(text_valid)

    # stage 1: kv = all vision + text
    bias1 = _mask_to_bias(jnp.concatenate([vision_valid, text_valid]))
    m1 = token_selection(p["m1"], vision_pad, vision_valid, combined, bias1,
                         text_pad, text_bias, k1)

    # stage 2: kv vision part restricted to stage-1 selected tokens
    bias2 = _mask_to_bias(jnp.concatenate([m1, text_valid]))
    m2 = token_selection(p["m2"], vision_pad, m1, combined, bias2,
                         text_pad, text_bias, k2)
    return m2


@jax.jit
def _router_device(params, vision_pad, text_pad, vision_valid, text_valid, key):
    mask = stacked_selection(params["selector"], vision_pad, vision_valid,
                             text_pad, text_valid, key)
    merged = merge_forward(vision_pad, mask, vision_valid)
    return merged, mask


def cos_sim_router_forward(params, vision, text, attention_mask, key, top_k=0):
    del attention_mask  # accepted but unused, as in the torch module
    l_v, d = vision.shape
    l_t, _ = text.shape
    # TODO(synk): embed dims that are not multiples of 128 would need head-aware
    # feature padding; not required for this configuration.
    assert d % 128 == 0 and d % NUM_HEADS == 0

    lvp, _ = _pad_block(l_v, M_BLOCK, 8)
    ltp = _round_up(l_t, 8)
    vision_pad = jnp.pad(vision.astype(jnp.float32), ((0, lvp - l_v), (0, 0)))
    text_pad = jnp.pad(text.astype(jnp.float32), ((0, ltp - l_t), (0, 0)))
    vision_valid = jnp.arange(lvp) < l_v
    text_valid = jnp.arange(ltp) < l_t

    merged, mask = _router_device(params, vision_pad, text_pad,
                                  vision_valid, text_valid, key)

    # Single host sync: the module's output size is data-dependent (number of
    # selected tokens), so the final gather is inherently dynamic.
    sel_idx = np.nonzero(np.asarray(mask))[0].astype(np.int32)
    selected = merged[jnp.asarray(sel_idx)]

    if top_k == 0:
        return selected

    # Non-default top_k > 0 path (plain JAX glue; not the hot path).
    sn_ = selected / jnp.maximum(jnp.linalg.norm(selected, axis=-1, keepdims=True), 1e-8)
    vn = vision / jnp.maximum(jnp.linalg.norm(vision, axis=-1, keepdims=True), 1e-8)
    cos = sn_ @ vn.T
    topv, topi = jax.lax.top_k(cos, top_k)
    w = jax.nn.softmax(topv, axis=-1)
    return jnp.sum(vision[topi] * w[..., None], axis=1)


# ---------------------------------------------------------------------------
if __name__ == "__main__":
    key = jax.random.PRNGKey(0)
    k_param, k_data, k_gumbel = jax.random.split(key, 3)
    params = init_router_params(k_param)

    L_v, L_t, D = 16, 8, EMBED_DIM
    kv_key, kt_key = jax.random.split(k_data)
    vision_feature = jax.random.normal(kv_key, (L_v, D), dtype=jnp.float32)
    text_embed = jax.random.normal(kt_key, (L_t, D), dtype=jnp.float32)
    attention_mask = jnp.ones((L_t,), dtype=jnp.int32)

    out = cos_sim_router_forward(params, vision_feature, text_embed,
                                 attention_mask, k_gumbel, top_k=0)
    jax.block_until_ready(out)
    print("KERNEL_OK")
</pallas_src>

<mosaic_0001>
module attributes {stable_mosaic.version = 11 : i64} {
  func.func @_linear_kernel(%arg0: i32, %arg1: i32, %arg2: i32, %arg3: memref<24x128xbf16, #tpu.memory_space<vmem>>, %arg4: memref<128x256xbf16, #tpu.memory_space<vmem>>, %arg5: memref<1x256xf32, #tpu.memory_space<vmem>>, %arg6: memref<24x256xbf16, #tpu.memory_space<vmem>>, %arg7: memref<24x256xf32, #tpu.memory_space<vmem>>) attributes {dimension_semantics = [#tpu.dimension_semantics<parallel>, #tpu.dimension_semantics<parallel>, #tpu.dimension_semantics<arbitrary>], iteration_bounds = array<i64: 1, 1, 1>, scalar_prefetch = 0 : i64, scratch_operands = 1 : i64, tpu.core_type = #tpu.core_type<tc>, window_params = [{transform_indices = @transform_0, window_bounds = array<i64: 24, 128>}, {transform_indices = @transform_1, window_bounds = array<i64: 128, 256>}, {transform_indices = @transform_2, window_bounds = array<i64: 1, 256>}, {transform_indices = @transform_3, window_bounds = array<i64: 24, 256>}]} {
    %c0_i32 = arith.constant 0 : i32
    %0 = arith.cmpi eq, %arg2, %c0_i32 : i32
    %1 = arith.extui %0 : i1 to i32
    %c0_i32_0 = arith.constant 0 : i32
    %2 = arith.cmpi ne, %1, %c0_i32_0 : i32
    scf.if %2 {
      %cst_10 = arith.constant 0.000000e+00 : f32
      %12 = vector.broadcast %cst_10 : f32 to vector<24x256xf32>
      %c0_11 = arith.constant 0 : index
      %c0_12 = arith.constant 0 : index
      %13 = vector.load %arg7[%c0_11, %c0_12] : memref<24x256xf32, #tpu.memory_space<vmem>>, vector<24x256xf32>
      tpu.vector_store %arg7[%c0_11, %c0_12], %12 {strides = array<i32>} : memref<24x256xf32, #tpu.memory_space<vmem>>, vector<24x256xf32>,
    } else {
    }
    %c0 = arith.constant 0 : index
    %c0_1 = arith.constant 0 : index
    %3 = vector.load %arg7[%c0, %c0_1] : memref<24x256xf32, #tpu.memory_space<vmem>>, vector<24x256xf32>
    %c0_2 = arith.constant 0 : index
    %c0_3 = arith.constant 0 : index
    %4 = vector.load %arg3[%c0_2, %c0_3] : memref<24x128xbf16, #tpu.memory_space<vmem>>, vector<24x128xbf16>
    %c0_4 = arith.constant 0 : index
    %c0_5 = arith.constant 0 : index
    %5 = vector.load %arg4[%c0_4, %c0_5] : memref<128x256xbf16, #tpu.memory_space<vmem>>, vector<128x256xbf16>
    %cst = arith.constant dense<0.000000e+00> : vector<24x256xf32>
    %6 = tpu.matmul %4, %5, %cst {dimension_numbers = #tpu.dot_dimension_numbers<[1], [0], [0], [1], [0, 0, 1, 1], [], []>} : vector<24x128xbf16>, vector<128x256xbf16>, vector<24x256xf32> -> vector<24x256xf32>
    %7 = arith.addf %3, %6 : vector<24x256xf32>
    %c0_6 = arith.constant 0 : index
    %c0_7 = arith.constant 0 : index
    %8 = vector.load %arg7[%c0_6, %c0_7] : memref<24x256xf32, #tpu.memory_space<vmem>>, vector<24x256xf32>
    tpu.vector_store %arg7[%c0_6, %c0_7], %7 {strides = array<i32>} : memref<24x256xf32, #tpu.memory_space<vmem>>, vector<24x256xf32>,
    %c0_i32_8 = arith.constant 0 : i32
    %9 = arith.cmpi eq, %arg2, %c0_i32_8 : i32
    %10 = arith.extui %9 : i1 to i32
    %c0_i32_9 = arith.constant 0 : i32
    %11 = arith.cmpi ne, %10, %c0_i32_9 : i32
    scf.if %11 {
      %c0_10 = arith.constant 0 : index
      %c0_11 = arith.constant 0 : index
      %12 = vector.load %arg7[%c0_10, %c0_11] : memref<24x256xf32, #tpu.memory_space<vmem>>, vector<24x256xf32>
      %c0_12 = arith.constant 0 : index
      %c0_13 = arith.constant 0 : index
      %13 = vector.load %arg5[%c0_12, %c0_13] : memref<1x256xf32, #tpu.memory_space<vmem>>, vector<1x256xf32>
      %14 = vector.broadcast %13 : vector<1x256xf32> to vector<24x256xf32>
      %15 = arith.addf %12, %14 : vector<24x256xf32>
      %16 = arith.truncf %15 : vector<24x256xf32> to vector<24x256xbf16>
      %c0_14 = arith.constant 0 : index
      %c0_15 = arith.constant 0 : index
      %17 = vector.load %arg6[%c0_14, %c0_15] : memref<24x256xbf16, #tpu.memory_space<vmem>>, vector<24x256xbf16>
      tpu.vector_store %arg6[%c0_14, %c0_15], %16 {strides = array<i32>} : memref<24x256xbf16, #tpu.memory_space<vmem>>, vector<24x256xbf16>,
    } else {
    }
    return
  }
  func.func @transform_0(%arg0: i32, %arg1: i32, %arg2: i32) -> (i32, i32) {
    %c0_i32 = arith.constant 0 : i32
    return %arg0, %arg2 : i32, i32
  }
  func.func @transform_1(%arg0: i32, %arg1: i32, %arg2: i32) -> (i32, i32) {
    %c0_i32 = arith.constant 0 : i32
    return %arg2, %arg1 : i32, i32
  }
  func.func @transform_2(%arg0: i32, %arg1: i32, %arg2: i32) -> (i32, i32) {
    %c0_i32 = arith.constant 0 : i32
    %c0_i32_0 = arith.constant 0 : i32
    return %c0_i32, %arg1 : i32, i32
  }
  func.func @transform_3(%arg0: i32, %arg1: i32, %arg2: i32) -> (i32, i32) {
    %c0_i32 = arith.constant 0 : i32
    return %arg0, %arg1 : i32, i32
  }
}

module attributes {stable_mosaic.version = 11 : i64} {
  func.func @_linear_kernel(%arg0: i32, %arg1: i32, %arg2: i32, %arg3: memref<16x128xbf16, #tpu.memory_space<vmem>>, %arg4: memref<128x128xbf16, #tpu.memory_space<vmem>>, %arg5: memref<1x128xf32, #tpu.memory_space<vmem>>, %arg6: memref<16x128xbf16, #tpu.memory_space<vmem>>, %arg7: memref<16x128xf32, #tpu.memory_space<vmem>>) attributes {dimension_semantics = [#tpu.dimension_semantics<parallel>, #tpu.dimension_semantics<parallel>, #tpu.dimension_semantics<arbitrary>], iteration_bounds = array<i64: 1, 1, 1>, scalar_prefetch = 0 : i64, scratch_operands = 1 : i64, tpu.core_type = #tpu.core_type<tc>, window_params = [{transform_indices = @transform_0, window_bounds = array<i64: 16, 128>}, {transform_indices = @transform_1, window_bounds = array<i64: 128, 128>}, {transform_indices = @transform_2, window_bounds = array<i64: 1, 128>}, {transform_indices = @transform_3, window_bounds = array<i64: 16, 128>}]} {
    %c0_i32 = arith.constant 0 : i32
    %0 = arith.cmpi eq, %arg2, %c0_i32 : i32
    %1 = arith.extui %0 : i1 to i32
    %c0_i32_0 = arith.constant 0 : i32
    %2 = arith.cmpi ne, %1, %c0_i32_0 : i32
    scf.if %2 {
      %cst_10 = arith.constant 0.000000e+00 : f32
      %12 = vector.broadcast %cst_10 : f32 to vector<16x128xf32>
      %c0_11 = arith.constant 0 : index
      %c0_12 = arith.constant 0 : index
      %13 = vector.load %arg7[%c0_11, %c0_12] : memref<16x128xf32, #tpu.memory_space<vmem>>, vector<16x128xf32>
      tpu.vector_store %arg7[%c0_11, %c0_12], %12 {strides = array<i32>} : memref<16x128xf32, #tpu.memory_space<vmem>>, vector<16x128xf32>,
    } else {
    }
    %c0 = arith.constant 0 : index
    %c0_1 = arith.constant 0 : index
    %3 = vector.load %arg7[%c0, %c0_1] : memref<16x128xf32, #tpu.memory_space<vmem>>, vector<16x128xf32>
    %c0_2 = arith.constant 0 : index
    %c0_3 = arith.constant 0 : index
    %4 = vector.load %arg3[%c0_2, %c0_3] : memref<16x128xbf16, #tpu.memory_space<vmem>>, vector<16x128xbf16>
    %c0_4 = arith.constant 0 : index
    %c0_5 = arith.constant 0 : index
    %5 = vector.load %arg4[%c0_4, %c0_5] : memref<128x128xbf16, #tpu.memory_space<vmem>>, vector<128x128xbf16>
    %cst = arith.constant dense<0.000000e+00> : vector<16x128xf32>
    %6 = tpu.matmul %4, %5, %cst {dimension_numbers = #tpu.dot_dimension_numbers<[1], [0], [0], [1], [0, 0, 1, 1], [], []>} : vector<16x128xbf16>, vector<128x128xbf16>, vector<16x128xf32> -> vector<16x128xf32>
    %7 = arith.addf %3, %6 : vector<16x128xf32>
    %c0_6 = arith.constant 0 : index
    %c0_7 = arith.constant 0 : index
    %8 = vector.load %arg7[%c0_6, %c0_7] : memref<16x128xf32, #tpu.memory_space<vmem>>, vector<16x128xf32>
    tpu.vector_store %arg7[%c0_6, %c0_7], %7 {strides = array<i32>} : memref<16x128xf32, #tpu.memory_space<vmem>>, vector<16x128xf32>,
    %c0_i32_8 = arith.constant 0 : i32
    %9 = arith.cmpi eq, %arg2, %c0_i32_8 : i32
    %10 = arith.extui %9 : i1 to i32
    %c0_i32_9 = arith.constant 0 : i32
    %11 = arith.cmpi ne, %10, %c0_i32_9 : i32
    scf.if %11 {
      %c0_10 = arith.constant 0 : index
      %c0_11 = arith.constant 0 : index
      %12 = vector.load %arg7[%c0_10, %c0_11] : memref<16x128xf32, #tpu.memory_space<vmem>>, vector<16x128xf32>
      %c0_12 = arith.constant 0 : index
      %c0_13 = arith.constant 0 : index
      %13 = vector.load %arg5[%c0_12, %c0_13] : memref<1x128xf32, #tpu.memory_space<vmem>>, vector<1x128xf32>
      %14 = vector.broadcast %13 : vector<1x128xf32> to vector<16x128xf32>
      %15 = arith.addf %12, %14 : vector<16x128xf32>
      %16 = arith.truncf %15 : vector<16x128xf32> to vector<16x128xbf16>
      %c0_14 = arith.constant 0 : index
      %c0_15 = arith.constant 0 : index
      %17 = vector.load %arg6[%c0_14, %c0_15] : memref<16x128xbf16, #tpu.memory_space<vmem>>, vector<16x128xbf16>
      tpu.vector_store %arg6[%c0_14, %c0_15], %16 {strides = array<i32>} : memref<16x128xbf16, #tpu.memory_space<vmem>>, vector<16x128xbf16>,
    } else {
    }
    return
  }
  func.func @transform_0(%arg0: i32, %arg1: i32, %arg2: i32) -> (i32, i32) {
    %c0_i32 = arith.constant 0 : i32
    return %arg0, %arg2 : i32, i32
  }
  func.func @transform_1(%arg0: i32, %arg1: i32, %arg2: i32) -> (i32, i32) {
    %c0_i32 = arith.constant 0 : i32
    return %arg2, %arg1 : i32, i32
  }
  func.func @transform_2(%arg0: i32, %arg1: i32, %arg2: i32) -> (i32, i32) {
    %c0_i32 = arith.constant 0 : i32
    %c0_i32_0 = arith.constant 0 : i32
    return %c0_i32, %arg1 : i32, i32
  }
  func.func @transform_3(%arg0: i32, %arg1: i32, %arg2: i32) -> (i32, i32) {
    %c0_i32 = arith.constant 0 : i32
    return %arg0, %arg1 : i32, i32
  }
}

module attributes {stable_mosaic.version = 11 : i64} {
  func.func @_attn_core_kernel(%arg0: i32, %arg1: i32, %arg2: memref<1x16x32xbf16, #tpu.memory_space<vmem>>, %arg3: memref<1x24x32xbf16, #tpu.memory_space<vmem>>, %arg4: memref<1x24x32xbf16, #tpu.memory_space<vmem>>, %arg5: memref<1x24xf32, #tpu.memory_space<vmem>>, %arg6: memref<1x16x32xbf16, #tpu.memory_space<vmem>>) attributes {dimension_semantics = [#tpu.dimension_semantics<parallel>, #tpu.dimension_semantics<parallel>], iteration_bounds = array<i64: 4, 1>, scalar_prefetch = 0 : i64, scratch_operands = 0 : i64, tpu.core_type = #tpu.core_type<tc>, window_params = [{transform_indices = @transform_0, window_bounds = array<i64: 1, 16, 32>}, {transform_indices = @transform_1, window_bounds = array<i64: 1, 24, 32>}, {transform_indices = @transform_2, window_bounds = array<i64: 1, 24, 32>}, {pipeline_mode = #tpu.pipeline_mode<synchronous>, transform_indices = @transform_3, window_bounds = array<i64: 1, 24>}, {transform_indices = @transform_4, window_bounds = array<i64: 1, 16, 32>}]} {
    %c0 = arith.constant 0 : index
    %c0_0 = arith.constant 0 : index
    %c0_1 = arith.constant 0 : index
    %0 = vector.load %arg2[%c0, %c0_0, %c0_1] : memref<1x16x32xbf16, #tpu.memory_space<vmem>>, vector<1x16x32xbf16>
    %1 = vector.shape_cast %0 : vector<1x16x32xbf16> to vector<16x32xbf16>
    %c0_2 = arith.constant 0 : index
    %c0_3 = arith.constant 0 : index
    %c0_4 = arith.constant 0 : index
    %2 = vector.load %arg3[%c0_2, %c0_3, %c0_4] : memref<1x24x32xbf16, #tpu.memory_space<vmem>>, vector<1x24x32xbf16>
    %3 = vector.shape_cast %2 : vector<1x24x32xbf16> to vector<24x32xbf16>
    %c0_5 = arith.constant 0 : index
    %c0_6 = arith.constant 0 : index
    %c0_7 = arith.constant 0 : index
    %4 = vector.load %arg4[%c0_5, %c0_6, %c0_7] : memref<1x24x32xbf16, #tpu.memory_space<vmem>>, vector<1x24x32xbf16>
    %5 = vector.shape_cast %4 : vector<1x24x32xbf16> to vector<24x32xbf16>
    %cst = arith.constant dense<0.000000e+00> : vector<16x24xf32>
    %6 = tpu.matmul %1, %3, %cst {dimension_numbers = #tpu.dot_dimension_numbers<[1], [1], [0], [0], [0, 0, 1, 0], [], []>} : vector<16x32xbf16>, vector<24x32xbf16>, vector<16x24xf32> -> vector<16x24xf32>
    %cst_8 = arith.constant 0.176776692 : f32
    %7 = vector.broadcast %cst_8 : f32 to vector<16x24xf32>
    %8 = arith.mulf %6, %7 : vector<16x24xf32>
    %c0_9 = arith.constant 0 : index
    %c0_10 = arith.constant 0 : index
    %9 = vector.load %arg5[%c0_9, %c0_10] : memref<1x24xf32, #tpu.memory_space<vmem>>, vector<1x24xf32>
    %10 = vector.broadcast %9 : vector<1x24xf32> to vector<16x24xf32>
    %11 = arith.addf %8, %10 : vector<16x24xf32>
    %cst_11 = arith.constant dense<0xFF800000> : vector<16xf32>
    %12 = vector.multi_reduction <maximumf>, %11, %cst_11 [1] : vector<16x24xf32> to vector<16xf32>
    %13 = vector.shape_cast %12 : vector<16xf32> to vector<16x1xf32>
    %14 = vector.broadcast %13 : vector<16x1xf32> to vector<16x24xf32>
    %15 = arith.subf %11, %14 : vector<16x24xf32>
    %16 = math.exp %15 : vector<16x24xf32>
    %cst_12 = arith.constant dense<0.000000e+00> : vector<16xf32>
    %17 = vector.multi_reduction <add>, %16, %cst_12 [1] : vector<16x24xf32> to vector<16xf32>
    %18 = vector.shape_cast %17 : vector<16xf32> to vector<16x1xf32>
    %19 = tpu.reciprocal %18 {approx = true} : vector<16x1xf32> -> vector<16x1xf32>
    %20 = vector.broadcast %19 : vector<16x1xf32> to vector<16x24xf32>
    %21 = arith.mulf %16, %20 : vector<16x24xf32>
    %22 = arith.truncf %21 : vector<16x24xf32> to vector<16x24xbf16>
    %cst_13 = arith.constant dense<0.000000e+00> : vector<16x32xf32>
    %23 = tpu.matmul %22, %5, %cst_13 {dimension_numbers = #tpu.dot_dimension_numbers<[1], [0], [0], [1], [0, 0, 1, 1], [], []>} : vector<16x24xbf16>, vector<24x32xbf16>, vector<16x32xf32> -> vector<16x32xf32>
    %24 = arith.truncf %23 : vector<16x32xf32> to vector<16x32xbf16>
    %c0_14 = arith.constant 0 : index
    %c0_15 = arith.constant 0 : index
    %c0_16 = arith.constant 0 : index
    %25 = vector.load %arg6[%c0_14, %c0_15, %c0_16] : memref<1x16x32xbf16, #tpu.memory_space<vmem>>, vector<1x16x32xbf16>
    %26 = vector.shape_cast %25 : vector<1x16x32xbf16> to vector<16x32xbf16>
    %27 = vector.shape_cast %24 : vector<16x32xbf16> to vector<1x16x32xbf16>
    tpu.vector_store %arg6[%c0_14, %c0_15, %c0_16], %27 {strides = array<i32>} : memref<1x16x32xbf16, #tpu.memory_space<vmem>>, vector<1x16x32xbf16>,
    return
  }
  func.func @transform_0(%arg0: i32, %arg1: i32) -> (i32, i32, i32) {
    %c0_i32 = arith.constant 0 : i32
    %c0_i32_0 = arith.constant 0 : i32
    return %arg0, %arg1, %c0_i32 : i32, i32, i32
  }
  func.func @transform_1(%arg0: i32, %arg1: i32) -> (i32, i32, i32) {
    %c0_i32 = arith.constant 0 : i32
    %c0_i32_0 = arith.constant 0 : i32
    %c0_i32_1 = arith.constant 0 : i32
    return %arg0, %c0_i32, %c0_i32_0 : i32, i32, i32
  }
  func.func @transform_2(%arg0: i32, %arg1: i32) -> (i32, i32, i32) {
    %c0_i32 = arith.constant 0 : i32
    %c0_i32_0 = arith.constant 0 : i32
    %c0_i32_1 = arith.constant 0 : i32
    return %arg0, %c0_i32, %c0_i32_0 : i32, i32, i32
  }
  func.func @transform_3(%arg0: i32, %arg1: i32) -> (i32, i32) {
    %c0_i32 = arith.constant 0 : i32
    %c0_i32_0 = arith.constant 0 : i32
    %c0_i32_1 = arith.constant 0 : i32
    return %c0_i32, %c0_i32_0 : i32, i32
  }
  func.func @transform_4(%arg0: i32, %arg1: i32) -> (i32, i32, i32) {
    %c0_i32 = arith.constant 0 : i32
    %c0_i32_0 = arith.constant 0 : i32
    return %arg0, %arg1, %c0_i32 : i32, i32, i32
  }
}

module attributes {stable_mosaic.version = 11 : i64} {
  func.func @_linear_kernel(%arg0: i32, %arg1: i32, %arg2: i32, %arg3: memref<16x128xbf16, #tpu.memory_space<vmem>>, %arg4: memref<128x128xbf16, #tpu.memory_space<vmem>>, %arg5: memref<1x128xf32, #tpu.memory_space<vmem>>, %arg6: memref<16x128xf32, #tpu.memory_space<vmem>>, %arg7: memref<16x128xf32, #tpu.memory_space<vmem>>) attributes {dimension_semantics = [#tpu.dimension_semantics<parallel>, #tpu.dimension_semantics<parallel>, #tpu.dimension_semantics<arbitrary>], iteration_bounds = array<i64: 1, 1, 1>, scalar_prefetch = 0 : i64, scratch_operands = 1 : i64, tpu.core_type = #tpu.core_type<tc>, window_params = [{transform_indices = @transform_0, window_bounds = array<i64: 16, 128>}, {transform_indices = @transform_1, window_bounds = array<i64: 128, 128>}, {transform_indices = @transform_2, window_bounds = array<i64: 1, 128>}, {transform_indices = @transform_3, window_bounds = array<i64: 16, 128>}]} {
    %c0_i32 = arith.constant 0 : i32
    %0 = arith.cmpi eq, %arg2, %c0_i32 : i32
    %1 = arith.extui %0 : i1 to i32
    %c0_i32_0 = arith.constant 0 : i32
    %2 = arith.cmpi ne, %1, %c0_i32_0 : i32
    scf.if %2 {
      %cst_10 = arith.constant 0.000000e+00 : f32
      %12 = vector.broadcast %cst_10 : f32 to vector<16x128xf32>
      %c0_11 = arith.constant 0 : index
      %c0_12 = arith.constant 0 : index
      %13 = vector.load %arg7[%c0_11, %c0_12] : memref<16x128xf32, #tpu.memory_space<vmem>>, vector<16x128xf32>
      tpu.vector_store %arg7[%c0_11, %c0_12], %12 {strides = array<i32>} : memref<16x128xf32, #tpu.memory_space<vmem>>, vector<16x128xf32>,
    } else {
    }
    %c0 = arith.constant 0 : index
    %c0_1 = arith.constant 0 : index
    %3 = vector.load %arg7[%c0, %c0_1] : memref<16x128xf32, #tpu.memory_space<vmem>>, vector<16x128xf32>
    %c0_2 = arith.constant 0 : index
    %c0_3 = arith.constant 0 : index
    %4 = vector.load %arg3[%c0_2, %c0_3] : memref<16x128xbf16, #tpu.memory_space<vmem>>, vector<16x128xbf16>
    %c0_4 = arith.constant 0 : index
    %c0_5 = arith.constant 0 : index
    %5 = vector.load %arg4[%c0_4, %c0_5] : memref<128x128xbf16, #tpu.memory_space<vmem>>, vector<128x128xbf16>
    %cst = arith.constant dense<0.000000e+00> : vector<16x128xf32>
    %6 = tpu.matmul %4, %5, %cst {dimension_numbers = #tpu.dot_dimension_numbers<[1], [0], [0], [1], [0, 0, 1, 1], [], []>} : vector<16x128xbf16>, vector<128x128xbf16>, vector<16x128xf32> -> vector<16x128xf32>
    %7 = arith.addf %3, %6 : vector<16x128xf32>
    %c0_6 = arith.constant 0 : index
    %c0_7 = arith.constant 0 : index
    %8 = vector.load %arg7[%c0_6, %c0_7] : memref<16x128xf32, #tpu.memory_space<vmem>>, vector<16x128xf32>
    tpu.vector_store %arg7[%c0_6, %c0_7], %7 {strides = array<i32>} : memref<16x128xf32, #tpu.memory_space<vmem>>, vector<16x128xf32>,
    %c0_i32_8 = arith.constant 0 : i32
    %9 = arith.cmpi eq, %arg2, %c0_i32_8 : i32
    %10 = arith.extui %9 : i1 to i32
    %c0_i32_9 = arith.constant 0 : i32
    %11 = arith.cmpi ne, %10, %c0_i32_9 : i32
    scf.if %11 {
      %c0_10 = arith.constant 0 : index
      %c0_11 = arith.constant 0 : index
      %12 = vector.load %arg7[%c0_10, %c0_11] : memref<16x128xf32, #tpu.memory_space<vmem>>, vector<16x128xf32>
      %c0_12 = arith.constant 0 : index
      %c0_13 = arith.constant 0 : index
      %13 = vector.load %arg5[%c0_12, %c0_13] : memref<1x128xf32, #tpu.memory_space<vmem>>, vector<1x128xf32>
      %14 = vector.broadcast %13 : vector<1x128xf32> to vector<16x128xf32>
      %15 = arith.addf %12, %14 : vector<16x128xf32>
      %c0_14 = arith.constant 0 : index
      %c0_15 = arith.constant 0 : index
      %16 = vector.load %arg6[%c0_14, %c0_15] : memref<16x128xf32, #tpu.memory_space<vmem>>, vector<16x128xf32>
      tpu.vector_store %arg6[%c0_14, %c0_15], %15 {strides = array<i32>} : memref<16x128xf32, #tpu.memory_space<vmem>>, vector<16x128xf32>,
    } else {
    }
    return
  }
  func.func @transform_0(%arg0: i32, %arg1: i32, %arg2: i32) -> (i32, i32) {
    %c0_i32 = arith.constant 0 : i32
    return %arg0, %arg2 : i32, i32
  }
  func.func @transform_1(%arg0: i32, %arg1: i32, %arg2: i32) -> (i32, i32) {
    %c0_i32 = arith.constant 0 : i32
    return %arg2, %arg1 : i32, i32
  }
  func.func @transform_2(%arg0: i32, %arg1: i32, %arg2: i32) -> (i32, i32) {
    %c0_i32 = arith.constant 0 : i32
    %c0_i32_0 = arith.constant 0 : i32
    return %c0_i32, %arg1 : i32, i32
  }
  func.func @transform_3(%arg0: i32, %arg1: i32, %arg2: i32) -> (i32, i32) {
    %c0_i32 = arith.constant 0 : i32
    return %arg0, %arg1 : i32, i32
  }
}

module attributes {stable_mosaic.version = 11 : i64} {
  func.func @_linear_kernel(%arg0: i32, %arg1: i32, %arg2: i32, %arg3: memref<8x128xbf16, #tpu.memory_space<vmem>>, %arg4: memref<128x256xbf16, #tpu.memory_space<vmem>>, %arg5: memref<1x256xf32, #tpu.memory_space<vmem>>, %arg6: memref<8x256xbf16, #tpu.memory_space<vmem>>, %arg7: memref<8x256xf32, #tpu.memory_space<vmem>>) attributes {dimension_semantics = [#tpu.dimension_semantics<parallel>, #tpu.dimension_semantics<parallel>, #tpu.dimension_semantics<arbitrary>], iteration_bounds = array<i64: 1, 1, 1>, scalar_prefetch = 0 : i64, scratch_operands = 1 : i64, tpu.core_type = #tpu.core_type<tc>, window_params = [{transform_indices = @transform_0, window_bounds = array<i64: 8, 128>}, {transform_indices = @transform_1, window_bounds = array<i64: 128, 256>}, {transform_indices = @transform_2, window_bounds = array<i64: 1, 256>}, {transform_indices = @transform_3, window_bounds = array<i64: 8, 256>}]} {
    %c0_i32 = arith.constant 0 : i32
    %0 = arith.cmpi eq, %arg2, %c0_i32 : i32
    %1 = arith.extui %0 : i1 to i32
    %c0_i32_0 = arith.constant 0 : i32
    %2 = arith.cmpi ne, %1, %c0_i32_0 : i32
    scf.if %2 {
      %cst_10 = arith.constant 0.000000e+00 : f32
      %12 = vector.broadcast %cst_10 : f32 to vector<8x256xf32>
      %c0_11 = arith.constant 0 : index
      %c0_12 = arith.constant 0 : index
      %13 = vector.load %arg7[%c0_11, %c0_12] : memref<8x256xf32, #tpu.memory_space<vmem>>, vector<8x256xf32>
      tpu.vector_store %arg7[%c0_11, %c0_12], %12 {strides = array<i32>} : memref<8x256xf32, #tpu.memory_space<vmem>>, vector<8x256xf32>,
    } else {
    }
    %c0 = arith.constant 0 : index
    %c0_1 = arith.constant 0 : index
    %3 = vector.load %arg7[%c0, %c0_1] : memref<8x256xf32, #tpu.memory_space<vmem>>, vector<8x256xf32>
    %c0_2 = arith.constant 0 : index
    %c0_3 = arith.constant 0 : index
    %4 = vector.load %arg3[%c0_2, %c0_3] : memref<8x128xbf16, #tpu.memory_space<vmem>>, vector<8x128xbf16>
    %c0_4 = arith.constant 0 : index
    %c0_5 = arith.constant 0 : index
    %5 = vector.load %arg4[%c0_4, %c0_5] : memref<128x256xbf16, #tpu.memory_space<vmem>>, vector<128x256xbf16>
    %cst = arith.constant dense<0.000000e+00> : vector<8x256xf32>
    %6 = tpu.matmul %4, %5, %cst {dimension_numbers = #tpu.dot_dimension_numbers<[1], [0], [0], [1], [0, 0, 1, 1], [], []>} : vector<8x128xbf16>, vector<128x256xbf16>, vector<8x256xf32> -> vector<8x256xf32>
    %7 = arith.addf %3, %6 : vector<8x256xf32>
    %c0_6 = arith.constant 0 : index
    %c0_7 = arith.constant 0 : index
    %8 = vector.load %arg7[%c0_6, %c0_7] : memref<8x256xf32, #tpu.memory_space<vmem>>, vector<8x256xf32>
    tpu.vector_store %arg7[%c0_6, %c0_7], %7 {strides = array<i32>} : memref<8x256xf32, #tpu.memory_space<vmem>>, vector<8x256xf32>,
    %c0_i32_8 = arith.constant 0 : i32
    %9 = arith.cmpi eq, %arg2, %c0_i32_8 : i32
    %10 = arith.extui %9 : i1 to i32
    %c0_i32_9 = arith.constant 0 : i32
    %11 = arith.cmpi ne, %10, %c0_i32_9 : i32
    scf.if %11 {
      %c0_10 = arith.constant 0 : index
      %c0_11 = arith.constant 0 : index
      %12 = vector.load %arg7[%c0_10, %c0_11] : memref<8x256xf32, #tpu.memory_space<vmem>>, vector<8x256xf32>
      %c0_12 = arith.constant 0 : index
      %c0_13 = arith.constant 0 : index
      %13 = vector.load %arg5[%c0_12, %c0_13] : memref<1x256xf32, #tpu.memory_space<vmem>>, vector<1x256xf32>
      %14 = vector.broadcast %13 : vector<1x256xf32> to vector<8x256xf32>
      %15 = arith.addf %12, %14 : vector<8x256xf32>
      %16 = arith.truncf %15 : vector<8x256xf32> to vector<8x256xbf16>
      %c0_14 = arith.constant 0 : index
      %c0_15 = arith.constant 0 : index
      %17 = vector.load %arg6[%c0_14, %c0_15] : memref<8x256xbf16, #tpu.memory_space<vmem>>, vector<8x256xbf16>
      tpu.vector_store %arg6[%c0_14, %c0_15], %16 {strides = array<i32>} : memref<8x256xbf16, #tpu.memory_space<vmem>>, vector<8x256xbf16>,
    } else {
    }
    return
  }
  func.func @transform_0(%arg0: i32, %arg1: i32, %arg2: i32) -> (i32, i32) {
    %c0_i32 = arith.constant 0 : i32
    return %arg0, %arg2 : i32, i32
  }
  func.func @transform_1(%arg0: i32, %arg1: i32, %arg2: i32) -> (i32, i32) {
    %c0_i32 = arith.constant 0 : i32
    return %arg2, %arg1 : i32, i32
  }
  func.func @transform_2(%arg0: i32, %arg1: i32, %arg2: i32) -> (i32, i32) {
    %c0_i32 = arith.constant 0 : i32
    %c0_i32_0 = arith.constant 0 : i32
    return %c0_i32, %arg1 : i32, i32
  }
  func.func @transform_3(%arg0: i32, %arg1: i32, %arg2: i32) -> (i32, i32) {
    %c0_i32 = arith.constant 0 : i32
    return %arg0, %arg1 : i32, i32
  }
}

module attributes {stable_mosaic.version = 11 : i64} {
  func.func @_attn_core_kernel(%arg0: i32, %arg1: i32, %arg2: memref<1x16x32xbf16, #tpu.memory_space<vmem>>, %arg3: memref<1x8x32xbf16, #tpu.memory_space<vmem>>, %arg4: memref<1x8x32xbf16, #tpu.memory_space<vmem>>, %arg5: memref<1x8xf32, #tpu.memory_space<vmem>>, %arg6: memref<1x16x32xbf16, #tpu.memory_space<vmem>>) attributes {dimension_semantics = [#tpu.dimension_semantics<parallel>, #tpu.dimension_semantics<parallel>], iteration_bounds = array<i64: 4, 1>, scalar_prefetch = 0 : i64, scratch_operands = 0 : i64, tpu.core_type = #tpu.core_type<tc>, window_params = [{transform_indices = @transform_0, window_bounds = array<i64: 1, 16, 32>}, {transform_indices = @transform_1, window_bounds = array<i64: 1, 8, 32>}, {transform_indices = @transform_2, window_bounds = array<i64: 1, 8, 32>}, {pipeline_mode = #tpu.pipeline_mode<synchronous>, transform_indices = @transform_3, window_bounds = array<i64: 1, 8>}, {transform_indices = @transform_4, window_bounds = array<i64: 1, 16, 32>}]} {
    %c0 = arith.constant 0 : index
    %c0_0 = arith.constant 0 : index
    %c0_1 = arith.constant 0 : index
    %0 = vector.load %arg2[%c0, %c0_0, %c0_1] : memref<1x16x32xbf16, #tpu.memory_space<vmem>>, vector<1x16x32xbf16>
    %1 = vector.shape_cast %0 : vector<1x16x32xbf16> to vector<16x32xbf16>
    %c0_2 = arith.constant 0 : index
    %c0_3 = arith.constant 0 : index
    %c0_4 = arith.constant 0 : index
    %2 = vector.load %arg3[%c0_2, %c0_3, %c0_4] : memref<1x8x32xbf16, #tpu.memory_space<vmem>>, vector<1x8x32xbf16>
    %3 = vector.shape_cast %2 : vector<1x8x32xbf16> to vector<8x32xbf16>
    %c0_5 = arith.constant 0 : index
    %c0_6 = arith.constant 0 : index
    %c0_7 = arith.constant 0 : index
    %4 = vector.load %arg4[%c0_5, %c0_6, %c0_7] : memref<1x8x32xbf16, #tpu.memory_space<vmem>>, vector<1x8x32xbf16>
    %5 = vector.shape_cast %4 : vector<1x8x32xbf16> to vector<8x32xbf16>
    %cst = arith.constant dense<0.000000e+00> : vector<16x8xf32>
    %6 = tpu.matmul %1, %3, %cst {dimension_numbers = #tpu.dot_dimension_numbers<[1], [1], [0], [0], [0, 0, 1, 0], [], []>} : vector<16x32xbf16>, vector<8x32xbf16>, vector<16x8xf32> -> vector<16x8xf32>
    %cst_8 = arith.constant 0.176776692 : f32
    %7 = vector.broadcast %cst_8 : f32 to vector<16x8xf32>
    %8 = arith.mulf %6, %7 : vector<16x8xf32>
    %c0_9 = arith.constant 0 : index
    %c0_10 = arith.constant 0 : index
    %9 = vector.load %arg5[%c0_9, %c0_10] : memref<1x8xf32, #tpu.memory_space<vmem>>, vector<1x8xf32>
    %10 = vector.broadcast %9 : vector<1x8xf32> to vector<16x8xf32>
    %11 = arith.addf %8, %10 : vector<16x8xf32>
    %cst_11 = arith.constant dense<0xFF800000> : vector<16xf32>
    %12 = vector.multi_reduction <maximumf>, %11, %cst_11 [1] : vector<16x8xf32> to vector<16xf32>
    %13 = vector.shape_cast %12 : vector<16xf32> to vector<16x1xf32>
    %14 = vector.broadcast %13 : vector<16x1xf32> to vector<16x8xf32>
    %15 = arith.subf %11, %14 : vector<16x8xf32>
    %16 = math.exp %15 : vector<16x8xf32>
    %cst_12 = arith.constant dense<0.000000e+00> : vector<16xf32>
    %17 = vector.multi_reduction <add>, %16, %cst_12 [1] : vector<16x8xf32> to vector<16xf32>
    %18 = vector.shape_cast %17 : vector<16xf32> to vector<16x1xf32>
    %19 = tpu.reciprocal %18 {approx = true} : vector<16x1xf32> -> vector<16x1xf32>
    %20 = vector.broadcast %19 : vector<16x1xf32> to vector<16x8xf32>
    %21 = arith.mulf %16, %20 : vector<16x8xf32>
    %22 = arith.truncf %21 : vector<16x8xf32> to vector<16x8xbf16>
    %cst_13 = arith.constant dense<0.000000e+00> : vector<16x32xf32>
    %23 = tpu.matmul %22, %5, %cst_13 {dimension_numbers = #tpu.dot_dimension_numbers<[1], [0], [0], [1], [0, 0, 1, 1], [], []>} : vector<16x8xbf16>, vector<8x32xbf16>, vector<16x32xf32> -> vector<16x32xf32>
    %24 = arith.truncf %23 : vector<16x32xf32> to vector<16x32xbf16>
    %c0_14 = arith.constant 0 : index
    %c0_15 = arith.constant 0 : index
    %c0_16 = arith.constant 0 : index
    %25 = vector.load %arg6[%c0_14, %c0_15, %c0_16] : memref<1x16x32xbf16, #tpu.memory_space<vmem>>, vector<1x16x32xbf16>
    %26 = vector.shape_cast %25 : vector<1x16x32xbf16> to vector<16x32xbf16>
    %27 = vector.shape_cast %24 : vector<16x32xbf16> to vector<1x16x32xbf16>
    tpu.vector_store %arg6[%c0_14, %c0_15, %c0_16], %27 {strides = array<i32>} : memref<1x16x32xbf16, #tpu.memory_space<vmem>>, vector<1x16x32xbf16>,
    return
  }
  func.func @transform_0(%arg0: i32, %arg1: i32) -> (i32, i32, i32) {
    %c0_i32 = arith.constant 0 : i32
    %c0_i32_0 = arith.constant 0 : i32
    return %arg0, %arg1, %c0_i32 : i32, i32, i32
  }
  func.func @transform_1(%arg0: i32, %arg1: i32) -> (i32, i32, i32) {
    %c0_i32 = arith.constant 0 : i32
    %c0_i32_0 = arith.constant 0 : i32
    %c0_i32_1 = arith.constant 0 : i32
    return %arg0, %c0_i32, %c0_i32_0 : i32, i32, i32
  }
  func.func @transform_2(%arg0: i32, %arg1: i32) -> (i32, i32, i32) {
    %c0_i32 = arith.constant 0 : i32
    %c0_i32_0 = arith.constant 0 : i32
    %c0_i32_1 = arith.constant 0 : i32
    return %arg0, %c0_i32, %c0_i32_0 : i32, i32, i32
  }
  func.func @transform_3(%arg0: i32, %arg1: i32) -> (i32, i32) {
    %c0_i32 = arith.constant 0 : i32
    %c0_i32_0 = arith.constant 0 : i32
    %c0_i32_1 = arith.constant 0 : i32
    return %c0_i32, %c0_i32_0 : i32, i32
  }
  func.func @transform_4(%arg0: i32, %arg1: i32) -> (i32, i32, i32) {
    %c0_i32 = arith.constant 0 : i32
    %c0_i32_0 = arith.constant 0 : i32
    return %arg0, %arg1, %c0_i32 : i32, i32, i32
  }
}

module attributes {stable_mosaic.version = 11 : i64} {
  func.func @_linear_kernel(%arg0: i32, %arg1: i32, %arg2: i32, %arg3: memref<32x128xbf16, #tpu.memory_space<vmem>>, %arg4: memref<128x128xbf16, #tpu.memory_space<vmem>>, %arg5: memref<1x128xf32, #tpu.memory_space<vmem>>, %arg6: memref<32x128xf32, #tpu.memory_space<vmem>>, %arg7: memref<32x128xf32, #tpu.memory_space<vmem>>) attributes {dimension_semantics = [#tpu.dimension_semantics<parallel>, #tpu.dimension_semantics<parallel>, #tpu.dimension_semantics<arbitrary>], iteration_bounds = array<i64: 1, 1, 1>, scalar_prefetch = 0 : i64, scratch_operands = 1 : i64, tpu.core_type = #tpu.core_type<tc>, window_params = [{transform_indices = @transform_0, window_bounds = array<i64: 32, 128>}, {transform_indices = @transform_1, window_bounds = array<i64: 128, 128>}, {transform_indices = @transform_2, window_bounds = array<i64: 1, 128>}, {transform_indices = @transform_3, window_bounds = array<i64: 32, 128>}]} {
    %c0_i32 = arith.constant 0 : i32
    %0 = arith.cmpi eq, %arg2, %c0_i32 : i32
    %1 = arith.extui %0 : i1 to i32
    %c0_i32_0 = arith.constant 0 : i32
    %2 = arith.cmpi ne, %1, %c0_i32_0 : i32
    scf.if %2 {
      %cst_10 = arith.constant 0.000000e+00 : f32
      %12 = vector.broadcast %cst_10 : f32 to vector<32x128xf32>
      %c0_11 = arith.constant 0 : index
      %c0_12 = arith.constant 0 : index
      %13 = vector.load %arg7[%c0_11, %c0_12] : memref<32x128xf32, #tpu.memory_space<vmem>>, vector<32x128xf32>
      tpu.vector_store %arg7[%c0_11, %c0_12], %12 {strides = array<i32>} : memref<32x128xf32, #tpu.memory_space<vmem>>, vector<32x128xf32>,
    } else {
    }
    %c0 = arith.constant 0 : index
    %c0_1 = arith.constant 0 : index
    %3 = vector.load %arg7[%c0, %c0_1] : memref<32x128xf32, #tpu.memory_space<vmem>>, vector<32x128xf32>
    %c0_2 = arith.constant 0 : index
    %c0_3 = arith.constant 0 : index
    %4 = vector.load %arg3[%c0_2, %c0_3] : memref<32x128xbf16, #tpu.memory_space<vmem>>, vector<32x128xbf16>
    %c0_4 = arith.constant 0 : index
    %c0_5 = arith.constant 0 : index
    %5 = vector.load %arg4[%c0_4, %c0_5] : memref<128x128xbf16, #tpu.memory_space<vmem>>, vector<128x128xbf16>
    %cst = arith.constant dense<0.000000e+00> : vector<32x128xf32>
    %6 = tpu.matmul %4, %5, %cst {dimension_numbers = #tpu.dot_dimension_numbers<[1], [0], [0], [1], [0, 0, 1, 1], [], []>} : vector<32x128xbf16>, vector<128x128xbf16>, vector<32x128xf32> -> vector<32x128xf32>
    %7 = arith.addf %3, %6 : vector<32x128xf32>
    %c0_6 = arith.constant 0 : index
    %c0_7 = arith.constant 0 : index
    %8 = vector.load %arg7[%c0_6, %c0_7] : memref<32x128xf32, #tpu.memory_space<vmem>>, vector<32x128xf32>
    tpu.vector_store %arg7[%c0_6, %c0_7], %7 {strides = array<i32>} : memref<32x128xf32, #tpu.memory_space<vmem>>, vector<32x128xf32>,
    %c0_i32_8 = arith.constant 0 : i32
    %9 = arith.cmpi eq, %arg2, %c0_i32_8 : i32
    %10 = arith.extui %9 : i1 to i32
    %c0_i32_9 = arith.constant 0 : i32
    %11 = arith.cmpi ne, %10, %c0_i32_9 : i32
    scf.if %11 {
      %c0_10 = arith.constant 0 : index
      %c0_11 = arith.constant 0 : index
      %12 = vector.load %arg7[%c0_10, %c0_11] : memref<32x128xf32, #tpu.memory_space<vmem>>, vector<32x128xf32>
      %c0_12 = arith.constant 0 : index
      %c0_13 = arith.constant 0 : index
      %13 = vector.load %arg5[%c0_12, %c0_13] : memref<1x128xf32, #tpu.memory_space<vmem>>, vector<1x128xf32>
      %14 = vector.broadcast %13 : vector<1x128xf32> to vector<32x128xf32>
      %15 = arith.addf %12, %14 : vector<32x128xf32>
      %cst_14 = arith.constant 0.000000e+00 : f32
      %16 = vector.broadcast %cst_14 : f32 to vector<32x128xf32>
      %17 = arith.maximumf %15, %16 : vector<32x128xf32>
      %c0_15 = arith.constant 0 : index
      %c0_16 = arith.constant 0 : index
      %18 = vector.load %arg6[%c0_15, %c0_16] : memref<32x128xf32, #tpu.memory_space<vmem>>, vector<32x128xf32>
      tpu.vector_store %arg6[%c0_15, %c0_16], %17 {strides = array<i32>} : memref<32x128xf32, #tpu.memory_space<vmem>>, vector<32x128xf32>,
    } else {
    }
    return
  }
  func.func @transform_0(%arg0: i32, %arg1: i32, %arg2: i32) -> (i32, i32) {
    %c0_i32 = arith.constant 0 : i32
    return %arg0, %arg2 : i32, i32
  }
  func.func @transform_1(%arg0: i32, %arg1: i32, %arg2: i32) -> (i32, i32) {
    %c0_i32 = arith.constant 0 : i32
    return %arg2, %arg1 : i32, i32
  }
  func.func @transform_2(%arg0: i32, %arg1: i32, %arg2: i32) -> (i32, i32) {
    %c0_i32 = arith.constant 0 : i32
    %c0_i32_0 = arith.constant 0 : i32
    return %c0_i32, %arg1 : i32, i32
  }
  func.func @transform_3(%arg0: i32, %arg1: i32, %arg2: i32) -> (i32, i32) {
    %c0_i32 = arith.constant 0 : i32
    return %arg0, %arg1 : i32, i32
  }
}

module attributes {stable_mosaic.version = 11 : i64} {
  func.func @_mlp_head_kernel(%arg0: i32, %arg1: memref<32x128xf32, #tpu.memory_space<vmem>>, %arg2: memref<1x128xf32, #tpu.memory_space<vmem>>, %arg3: memref<1x1xf32, #tpu.memory_space<vmem>>, %arg4: memref<32x1xf32, #tpu.memory_space<vmem>>) attributes {dimension_semantics = [#tpu.dimension_semantics<parallel>], iteration_bounds = array<i64: 1>, scalar_prefetch = 0 : i64, scratch_operands = 0 : i64, tpu.core_type = #tpu.core_type<tc>, window_params = [{transform_indices = @transform_0, window_bounds = array<i64: 32, 128>}, {pipeline_mode = #tpu.pipeline_mode<synchronous>, transform_indices = @transform_1, window_bounds = array<i64: 1, 128>}, {pipeline_mode = #tpu.pipeline_mode<synchronous>, transform_indices = @transform_2, window_bounds = array<i64: 1, 1>}, {transform_indices = @transform_3, window_bounds = array<i64: 32, 1>}]} {
    %c0 = arith.constant 0 : index
    %c0_0 = arith.constant 0 : index
    %0 = vector.load %arg1[%c0, %c0_0] : memref<32x128xf32, #tpu.memory_space<vmem>>, vector<32x128xf32>
    %c0_1 = arith.constant 0 : index
    %c0_2 = arith.constant 0 : index
    %1 = vector.load %arg2[%c0_1, %c0_2] : memref<1x128xf32, #tpu.memory_space<vmem>>, vector<1x128xf32>
    %2 = vector.broadcast %1 : vector<1x128xf32> to vector<32x128xf32>
    %3 = arith.mulf %0, %2 : vector<32x128xf32>
    %cst = arith.constant dense<0.000000e+00> : vector<32xf32>
    %4 = vector.multi_reduction <add>, %3, %cst [1] : vector<32x128xf32> to vector<32xf32>
    %5 = vector.shape_cast %4 : vector<32xf32> to vector<32x1xf32>
    %c0_3 = arith.constant 0 : index
    %c0_4 = arith.constant 0 : index
    %6 = vector.load %arg3[%c0_3, %c0_4] : memref<1x1xf32, #tpu.memory_space<vmem>>, vector<1x1xf32>
    %7 = vector.broadcast %6 : vector<1x1xf32> to vector<32x1xf32>
    %8 = arith.addf %5, %7 : vector<32x1xf32>
    %c0_5 = arith.constant 0 : index
    %c0_6 = arith.constant 0 : index
    %9 = vector.load %arg4[%c0_5, %c0_6] : memref<32x1xf32, #tpu.memory_space<vmem>>, vector<32x1xf32>
    tpu.vector_store %arg4[%c0_5, %c0_6], %8 {strides = array<i32>} : memref<32x1xf32, #tpu.memory_space<vmem>>, vector<32x1xf32>,
    return
  }
  func.func @transform_0(%arg0: i32) -> (i32, i32) {
    %c0_i32 = arith.constant 0 : i32
    %c0_i32_0 = arith.constant 0 : i32
    return %arg0, %c0_i32 : i32, i32
  }
  func.func @transform_1(%arg0: i32) -> (i32, i32) {
    %c0_i32 = arith.constant 0 : i32
    %c0_i32_0 = arith.constant 0 : i32
    %c0_i32_1 = arith.constant 0 : i32
    return %c0_i32, %c0_i32_0 : i32, i32
  }
  func.func @transform_2(%arg0: i32) -> (i32, i32) {
    %c0_i32 = arith.constant 0 : i32
    %c0_i32_0 = arith.constant 0 : i32
    %c0_i32_1 = arith.constant 0 : i32
    return %c0_i32, %c0_i32_0 : i32, i32
  }
  func.func @transform_3(%arg0: i32) -> (i32, i32) {
    %c0_i32 = arith.constant 0 : i32
    %c0_i32_0 = arith.constant 0 : i32
    return %arg0, %c0_i32 : i32, i32
  }
}

module attributes {stable_mosaic.version = 11 : i64} {
  func.func @_merge_kernel(%arg0: i32, %arg1: memref<16x128xf32, #tpu.memory_space<vmem>>, %arg2: memref<16x1xf32, #tpu.memory_space<vmem>>, %arg3: memref<16x128xbf16, #tpu.memory_space<vmem>>, %arg4: memref<16x128xf32, #tpu.memory_space<vmem>>, %arg5: memref<1x16xf32, #tpu.memory_space<vmem>>, %arg6: memref<1x16xf32, #tpu.memory_space<vmem>>, %arg7: memref<1x16xf32, #tpu.memory_space<vmem>>, %arg8: memref<16x128xf32, #tpu.memory_space<vmem>>, %arg9: memref<1x16xf32, #tpu.memory_space<vmem>>, %arg10: memref<16x128xf32, #tpu.memory_space<vmem>>, %arg11: memref<1x16xf32, #tpu.memory_space<vmem>>) attributes {dimension_semantics = [#tpu.dimension_semantics<arbitrary>], iteration_bounds = array<i64: 1>, scalar_prefetch = 0 : i64, scratch_operands = 3 : i64, tpu.core_type = #tpu.core_type<tc>, window_params = [{transform_indices = @transform_0, window_bounds = array<i64: 16, 128>}, {transform_indices = @transform_1, window_bounds = array<i64: 16, 1>}, {pipeline_mode = #tpu.pipeline_mode<synchronous>, transform_indices = @transform_2, window_bounds = array<i64: 16, 128>}, {pipeline_mode = #tpu.pipeline_mode<synchronous>, transform_indices = @transform_3, window_bounds = array<i64: 16, 128>}, {pipeline_mode = #tpu.pipeline_mode<synchronous>, transform_indices = @transform_4, window_bounds = array<i64: 1, 16>}, {pipeline_mode = #tpu.pipeline_mode<synchronous>, transform_indices = @transform_5, window_bounds = array<i64: 1, 16>}, {pipeline_mode = #tpu.pipeline_mode<synchronous>, transform_indices = @transform_6, window_bounds = array<i64: 1, 16>}, {pipeline_mode = #tpu.pipeline_mode<synchronous>, transform_indices = @transform_7, window_bounds = array<i64: 16, 128>}]} {
    %c0_i32 = arith.constant 0 : i32
    %0 = arith.cmpi eq, %arg0, %c0_i32 : i32
    %1 = arith.extui %0 : i1 to i32
    %c0_i32_0 = arith.constant 0 : i32
    %2 = arith.cmpi ne, %1, %c0_i32_0 : i32
    scf.if %2 {
      %cst_35 = arith.constant 0.000000e+00 : f32
      %62 = vector.broadcast %cst_35 : f32 to vector<1x16xf32>
      %c0_36 = arith.constant 0 : index
      %c0_37 = arith.constant 0 : index
      %63 = vector.load %arg9[%c0_36, %c0_37] : memref<1x16xf32, #tpu.memory_space<vmem>>, vector<1x16xf32>
      tpu.vector_store %arg9[%c0_36, %c0_37], %62 {strides = array<i32>} : memref<1x16xf32, #tpu.memory_space<vmem>>, vector<1x16xf32>,
      %cst_38 = arith.constant 0.000000e+00 : f32
      %64 = vector.broadcast %cst_38 : f32 to vector<16x128xf32>
      %c0_39 = arith.constant 0 : index
      %c0_40 = arith.constant 0 : index
      %65 = vector.load %arg10[%c0_39, %c0_40] : memref<16x128xf32, #tpu.memory_space<vmem>>, vector<16x128xf32>
      tpu.vector_store %arg10[%c0_39, %c0_40], %64 {strides = array<i32>} : memref<16x128xf32, #tpu.memory_space<vmem>>, vector<16x128xf32>,
      %cst_41 = arith.constant -1.000000e+30 : f32
      %66 = vector.broadcast %cst_41 : f32 to vector<1x16xf32>
      %c0_42 = arith.constant 0 : index
      %c0_43 = arith.constant 0 : index
      %67 = vector.load %arg11[%c0_42, %c0_43] : memref<1x16xf32, #tpu.memory_space<vmem>>, vector<1x16xf32>
      tpu.vector_store %arg11[%c0_42, %c0_43], %66 {strides = array<i32>} : memref<1x16xf32, #tpu.memory_space<vmem>>, vector<1x16xf32>,
    } else {
    }
    %c0 = arith.constant 0 : index
    %c0_1 = arith.constant 0 : index
    %3 = vector.load %arg1[%c0, %c0_1] : memref<16x128xf32, #tpu.memory_space<vmem>>, vector<16x128xf32>
    %c0_2 = arith.constant 0 : index
    %c0_3 = arith.constant 0 : index
    %4 = vector.load %arg2[%c0_2, %c0_3] : memref<16x1xf32, #tpu.memory_space<vmem>>, vector<16x1xf32>
    %5 = arith.mulf %3, %3 : vector<16x128xf32>
    %cst = arith.constant dense<0.000000e+00> : vector<16xf32>
    %6 = vector.multi_reduction <add>, %5, %cst [1] : vector<16x128xf32> to vector<16xf32>
    %7 = vector.shape_cast %6 : vector<16xf32> to vector<16x1xf32>
    %8 = math.sqrt %7 : vector<16x1xf32>
    %cst_4 = arith.constant 9.99999993E-9 : f32
    %9 = vector.broadcast %cst_4 : f32 to vector<16x1xf32>
    %10 = arith.maximumf %8, %9 : vector<16x1xf32>
    %11 = tpu.reciprocal %10 : vector<16x1xf32> -> vector<16x1xf32>
    %12 = arith.truncf %3 : vector<16x128xf32> to vector<16x128xbf16>
    %c0_5 = arith.constant 0 : index
    %c0_6 = arith.constant 0 : index
    %13 = vector.load %arg3[%c0_5, %c0_6] : memref<16x128xbf16, #tpu.memory_space<vmem>>, vector<16x128xbf16>
    %cst_7 = arith.constant dense<0.000000e+00> : vector<16x16xf32>
    %14 = tpu.matmul %12, %13, %cst_7 {dimension_numbers = #tpu.dot_dimension_numbers<[1], [1], [0], [0], [0, 0, 1, 0], [], []>} : vector<16x128xbf16>, vector<16x128xbf16>, vector<16x16xf32> -> vector<16x16xf32>
    %15 = vector.broadcast %11 : vector<16x1xf32> to vector<16x16xf32>
    %16 = arith.mulf %14, %15 : vector<16x16xf32>
    %c0_8 = arith.constant 0 : index
    %c0_9 = arith.constant 0 : index
    %17 = vector.load %arg7[%c0_8, %c0_9] : memref<1x16xf32, #tpu.memory_space<vmem>>, vector<1x16xf32>
    %18 = vector.broadcast %17 : vector<1x16xf32> to vector<16x16xf32>
    %19 = arith.mulf %16, %18 : vector<16x16xf32>
    %c0_10 = arith.constant 0 : index
    %c0_11 = arith.constant 0 : index
    %20 = vector.load %arg5[%c0_10, %c0_11] : memref<1x16xf32, #tpu.memory_space<vmem>>, vector<1x16xf32>
    %21 = vector.broadcast %20 : vector<1x16xf32> to vector<16x16xf32>
    %22 = arith.addf %19, %21 : vector<16x16xf32>
    %cst_12 = arith.constant dense<0xFF800000> : vector<16xf32>
    %23 = vector.multi_reduction <maximumf>, %22, %cst_12 [1] : vector<16x16xf32> to vector<16xf32>
    %24 = vector.shape_cast %23 : vector<16xf32> to vector<16x1xf32>
    %25 = tpu.iota {dimensions = array<i32: 1>} : vector<16x16xi32>
    %26 = vector.broadcast %24 : vector<16x1xf32> to vector<16x16xf32>
    %27 = arith.cmpf oge, %22, %26 : vector<16x16xf32>
    %c16_i32 = arith.constant 16 : i32
    %28 = vector.broadcast %c16_i32 : i32 to vector<16x16xi32>
    %29 = arith.select %27, %25, %28 : vector<16x16xi1>, vector<16x16xi32>
    %cst_13 = arith.constant dense<2147483647> : vector<16xi32>
    %30 = vector.multi_reduction <minsi>, %29, %cst_13 [1] : vector<16x16xi32> to vector<16xi32>
    %31 = vector.shape_cast %30 : vector<16xi32> to vector<16x1xi32>
    %32 = vector.broadcast %31 : vector<16x1xi32> to vector<16x16xi32>
    %33 = arith.cmpi eq, %25, %32 : vector<16x16xi32>
    %cst_14 = arith.constant 1.000000e+00 : f32
    %cst_15 = arith.constant 0.000000e+00 : f32
    %34 = vector.broadcast %cst_14 : f32 to vector<16x16xf32>
    %35 = vector.broadcast %cst_15 : f32 to vector<16x16xf32>
    %36 = arith.select %33, %34, %35 : vector<16x16xi1>, vector<16x16xf32>
    %37 = vector.broadcast %4 : vector<16x1xf32> to vector<16x16xf32>
    %38 = arith.mulf %36, %37 : vector<16x16xf32>
    %c0_16 = arith.constant 0 : index
    %c0_17 = arith.constant 0 : index
    %39 = vector.load %arg9[%c0_16, %c0_17] : memref<1x16xf32, #tpu.memory_space<vmem>>, vector<1x16xf32>
    %cst_18 = arith.constant dense<0.000000e+00> : vector<16xf32>
    %40 = vector.multi_reduction <add>, %38, %cst_18 [0] : vector<16x16xf32> to vector<16xf32>
    %41 = vector.shape_cast %40 : vector<16xf32> to vector<1x16xf32>
    %42 = arith.addf %39, %41 : vector<1x16xf32>
    %c0_19 = arith.constant 0 : index
    %c0_20 = arith.constant 0 : index
    %43 = vector.load %arg9[%c0_19, %c0_20] : memref<1x16xf32, #tpu.memory_space<vmem>>, vector<1x16xf32>
    tpu.vector_store %arg9[%c0_19, %c0_20], %42 {strides = array<i32>} : memref<1x16xf32, #tpu.memory_space<vmem>>, vector<1x16xf32>,
    %c0_21 = arith.constant 0 : index
    %c0_22 = arith.constant 0 : index
    %44 = vector.load %arg10[%c0_21, %c0_22] : memref<16x128xf32, #tpu.memory_space<vmem>>, vector<16x128xf32>
    %cst_23 = arith.constant dense<0.000000e+00> : vector<16x128xf32>
    %45 = tpu.matmul %38, %3, %cst_23 {dimension_numbers = #tpu.dot_dimension_numbers<[0], [0], [1], [1], [0, 1, 1, 1], [], []>} : vector<16x16xf32>, vector<16x128xf32>, vector<16x128xf32> -> vector<16x128xf32>
    %46 = arith.addf %44, %45 : vector<16x128xf32>
    %c0_24 = arith.constant 0 : index
    %c0_25 = arith.constant 0 : index
    %47 = vector.load %arg10[%c0_24, %c0_25] : memref<16x128xf32, #tpu.memory_space<vmem>>, vector<16x128xf32>
    tpu.vector_store %arg10[%c0_24, %c0_25], %46 {strides = array<i32>} : memref<16x128xf32, #tpu.memory_space<vmem>>, vector<16x128xf32>,
    %c0_26 = arith.constant 0 : index
    %c0_27 = arith.constant 0 : index
    %48 = vector.load %arg11[%c0_26, %c0_27] : memref<1x16xf32, #tpu.memory_space<vmem>>, vector<1x16xf32>
    %cst_28 = arith.constant 0.000000e+00 : f32
    %49 = vector.broadcast %cst_28 : f32 to vector<16x16xf32>
    %50 = arith.cmpf ogt, %38, %49 : vector<16x16xf32>
    %cst_29 = arith.constant -1.000000e+30 : f32
    %51 = vector.shape_cast %8 : vector<16x1xf32> to vector<16x1xf32>
    %52 = vector.broadcast %51 : vector<16x1xf32> to vector<16x16xf32>
    %53 = vector.broadcast %cst_29 : f32 to vector<16x16xf32>
    %54 = arith.select %50, %52, %53 : vector<16x16xi1>, vector<16x16xf32>
    %cst_30 = arith.constant dense<0xFF800000> : vector<16xf32>
    %55 = vector.multi_reduction <maximumf>, %54, %cst_30 [0] : vector<16x16xf32> to vector<16xf32>
    %56 = vector.shape_cast %55 : vector<16xf32> to vector<1x16xf32>
    %57 = arith.maximumf %48, %56 : vector<1x16xf32>
    %c0_31 = arith.constant 0 : index
    %c0_32 = arith.constant 0 : index
    %58 = vector.load %arg11[%c0_31, %c0_32] : memref<1x16xf32, #tpu.memory_space<vmem>>, vector<1x16xf32>
    tpu.vector_store %arg11[%c0_31, %c0_32], %57 {strides = array<i32>} : memref<1x16xf32, #tpu.memory_space<vmem>>, vector<1x16xf32>,
    %c0_i32_33 = arith.constant 0 : i32
    %59 = arith.cmpi eq, %arg0, %c0_i32_33 : i32
    %60 = arith.extui %59 : i1 to i32
    %c0_i32_34 = arith.constant 0 : i32
    %61 = arith.cmpi ne, %60, %c0_i32_34 : i32
    scf.if %61 {
      %c0_35 = arith.constant 0 : index
      %c0_36 = arith.constant 0 : index
      %62 = vector.load %arg4[%c0_35, %c0_36] : memref<16x128xf32, #tpu.memory_space<vmem>>, vector<16x128xf32>
      %c0_37 = arith.constant 0 : index
      %c0_38 = arith.constant 0 : index
      %63 = vector.load %arg9[%c0_37, %c0_38] : memref<1x16xf32, #tpu.memory_space<vmem>>, vector<1x16xf32>
      %64 = tpu.transpose %63, [1, 0] : vector<1x16xf32> -> vector<16x1xf32>
      %c0_39 = arith.constant 0 : index
      %c0_40 = arith.constant 0 : index
      %65 = vector.load %arg10[%c0_39, %c0_40] : memref<16x128xf32, #tpu.memory_space<vmem>>, vector<16x128xf32>
      %66 = arith.addf %62, %65 : vector<16x128xf32>
      %cst_41 = arith.constant 1.000000e+00 : f32
      %67 = vector.broadcast %cst_41 : f32 to vector<16x1xf32>
      %68 = arith.addf %67, %64 : vector<16x1xf32>
      %69 = tpu.reciprocal %68 : vector<16x1xf32> -> vector<16x1xf32>
      %70 = vector.broadcast %69 : vector<16x1xf32> to vector<16x128xf32>
      %71 = arith.mulf %66, %70 : vector<16x128xf32>
      %c0_42 = arith.constant 0 : index
      %c0_43 = arith.constant 0 : index
      %72 = vector.load %arg6[%c0_42, %c0_43] : memref<1x16xf32, #tpu.memory_space<vmem>>, vector<1x16xf32>
      %c0_44 = arith.constant 0 : index
      %c0_45 = arith.constant 0 : index
      %73 = vector.load %arg11[%c0_44, %c0_45] : memref<1x16xf32, #tpu.memory_space<vmem>>, vector<1x16xf32>
      %74 = arith.maximumf %72, %73 : vector<1x16xf32>
      %75 = tpu.transpose %74, [1, 0] : vector<1x16xf32> -> vector<16x1xf32>
      %76 = arith.mulf %71, %71 : vector<16x128xf32>
      %cst_46 = arith.constant dense<0.000000e+00> : vector<16xf32>
      %77 = vector.multi_reduction <add>, %76, %cst_46 [1] : vector<16x128xf32> to vector<16xf32>
      %78 = vector.shape_cast %77 : vector<16xf32> to vector<16x1xf32>
      %79 = math.sqrt %78 : vector<16x1xf32>
      %80 = tpu.reciprocal %79 {approx = true} : vector<16x1xf32> -> vector<16x1xf32>
      %81 = vector.broadcast %80 : vector<16x1xf32> to vector<16x128xf32>
      %82 = arith.mulf %71, %81 : vector<16x128xf32>
      %83 = vector.broadcast %75 : vector<16x1xf32> to vector<16x128xf32>
      %84 = arith.mulf %82, %83 : vector<16x128xf32>
      %cst_47 = arith.constant 0.000000e+00 : f32
      %85 = vector.broadcast %cst_47 : f32 to vector<16x1xf32>
      %86 = arith.cmpf ogt, %64, %85 : vector<16x1xf32>
      %87 = vector.shape_cast %86 : vector<16x1xi1> to vector<16x1xi1>
      %88 = vector.broadcast %87 : vector<16x1xi1> to vector<16x128xi1>
      %89 = arith.select %88, %84, %62 : vector<16x128xi1>, vector<16x128xf32>
      %c0_48 = arith.constant 0 : index
      %c0_49 = arith.constant 0 : index
      %90 = vector.load %arg8[%c0_48, %c0_49] : memref<16x128xf32, #tpu.memory_space<vmem>>, vector<16x128xf32>
      tpu.vector_store %arg8[%c0_48, %c0_49], %89 {strides = array<i32>} : memref<16x128xf32, #tpu.memory_space<vmem>>, vector<16x128xf32>,
    } else {
    }
    return
  }
  func.func @transform_0(%arg0: i32) -> (i32, i32) {
    %c0_i32 = arith.constant 0 : i32
    %c0_i32_0 = arith.constant 0 : i32
    return %arg0, %c0_i32 : i32, i32
  }
  func.func @transform_1(%arg0: i32) -> (i32, i32) {
    %c0_i32 = arith.constant 0 : i32
    %c0_i32_0 = arith.constant 0 : i32
    return %arg0, %c0_i32 : i32, i32
  }
  func.func @transform_2(%arg0: i32) -> (i32, i32) {
    %c0_i32 = arith.constant 0 : i32
    %c0_i32_0 = arith.constant 0 : i32
    %c0_i32_1 = arith.constant 0 : i32
    return %c0_i32, %c0_i32_0 : i32, i32
  }
  func.func @transform_3(%arg0: i32) -> (i32, i32) {
    %c0_i32 = arith.constant 0 : i32
    %c0_i32_0 = arith.constant 0 : i32
    %c0_i32_1 = arith.constant 0 : i32
    return %c0_i32, %c0_i32_0 : i32, i32
  }
  func.func @transform_4(%arg0: i32) -> (i32, i32) {
    %c0_i32 = arith.constant 0 : i32
    %c0_i32_0 = arith.constant 0 : i32
    %c0_i32_1 = arith.constant 0 : i32
    return %c0_i32, %c0_i32_0 : i32, i32
  }
  func.func @transform_5(%arg0: i32) -> (i32, i32) {
    %c0_i32 = arith.constant 0 : i32
    %c0_i32_0 = arith.constant 0 : i32
    %c0_i32_1 = arith.constant 0 : i32
    return %c0_i32, %c0_i32_0 : i32, i32
  }
  func.func @transform_6(%arg0: i32) -> (i32, i32) {
    %c0_i32 = arith.constant 0 : i32
    %c0_i32_0 = arith.constant 0 : i32
    %c0_i32_1 = arith.constant 0 : i32
    return %c0_i32, %c0_i32_0 : i32, i32
  }
  func.func @transform_7(%arg0: i32) -> (i32, i32) {
    %c0_i32 = arith.constant 0 : i32
    %c0_i32_0 = arith.constant 0 : i32
    %c0_i32_1 = arith.constant 0 : i32
    return %c0_i32, %c0_i32_0 : i32, i32
  }
}

</mosaic_0001>

<bundles_post_ra>
// kernel: _router_device.31
= control target key start
LH: loop header
LB: loop body
LE: loop exit
PB: predicated region body
PF: predicated region fallthrough
CT: control target
= control target key end

     0   :  { %v227_v0 = vmov 0.0   ;;  %vm228_vm0 = vmmov 0   ;;  %s282_s1 = inlined_call_operand.vmem [shape: bf16[128,128], index: 1, kind: input, shape index: {}]   ;;  %s283_s0 = inlined_call_operand.vmem [shape: bf16[16,128], index: 0, kind: input, shape index: {}]   ;;  %s284_s2 = inlined_call_operand.vmem [shape: f32[1,128], index: 2, kind: input, shape index: {}]   ;;  %s285_s3 = inlined_call_operand.vmem [shape: bf16[16,128], index: 3, kind: output, shape index: {}]  }
   0x1   :  { %196 = vmatprep.subr.bf16.mxu0 %v227_v0  ;;  %v218_v1 = vld [vmem:[%s282_s1] sm:$0xff]   ;;  %212 = vmatprep.mubr.msk.bf16.mxu0 %vm228_vm0, %v227_v0  ;;  %v219_v2 = vld [vmem:[%s282_s1 + $0x8] sm:$0xff]   ;;  %v220_v3 = vld [vmem:[%s282_s1 + $0x10] sm:$0xff]  }
   0x2   :  { %197 = vmatpush3.bf16.msra.mxu0 %v218_v1  ;;  %v221_v4 = vld [vmem:[%s282_s1 + $0x18] sm:$0xff]   ;;  %v222_v5 = vld [vmem:[%s282_s1 + $0x20] sm:$0xff]   ;;  %v223_v6 = vld [vmem:[%s282_s1 + $0x28] sm:$0xff]  }
   0x3   :  { %198 = vmatprep.subr.bf16.mxu0 %v227_v0  ;;  %v224_v7 = vld [vmem:[%s282_s1 + $0x30] sm:$0xff]   ;;  %v225_v8 = vld [vmem:[%s282_s1 + $0x38] sm:$0xff]   ;;  %v226_v9 = vld [vmem:[%s283_s0] sm:$0xff]  }
   0x4   :  { %v177_v11 = vld [vmem:[%s284_s2] ss:$0 sm:$0xff] }
   0x6   :  { %199 = vmatpush3.bf16.msra.mxu0 %v219_v2 }
   0x7   :  { %200 = vmatprep.subr.bf16.mxu0 %v227_v0 }
   0xa   :  { %201 = vmatpush3.bf16.msra.mxu0 %v220_v3 }
   0xb   :  { %202 = vmatprep.subr.bf16.mxu0 %v227_v0 }
   0xe   :  { %203 = vmatpush3.bf16.msra.mxu0 %v221_v4 }
   0xf   :  { %204 = vmatprep.subr.bf16.mxu0 %v227_v0 }
  0x12   :  { %205 = vmatpush3.bf16.msra.mxu0 %v222_v5 }
  0x13   :  { %206 = vmatprep.subr.bf16.mxu0 %v227_v0 }
  0x16   :  { %207 = vmatpush3.bf16.msra.mxu0 %v223_v6 }
  0x17   :  { %208 = vmatprep.subr.bf16.mxu0 %v227_v0 }
  0x1a   :  { %209 = vmatpush3.bf16.msra.mxu0 %v224_v7 }
  0x1b   :  { %210 = vmatprep.subr.bf16.mxu0 %v227_v0 }
  0x1e   :  { %211 = vmatpush3.bf16.msra.mxu0 %v225_v8 }
  0x21   :  { %213 = vmatmul.mubr.bf16.vlgmr.msra.gmra.mrb[0].mxu0 %v226_v9 }
  0xf4   :  { %v129_v10 = vpop.f32.mrb[0].mxu0 }
  0xf5   :  { %v214_v12 = vpop.f32.mrb[1].mxu0  ;;  %v152_v14 = vadd.f32 %v177_v11, %v129_v10 }
  0xf6   :  { %v132_v13 = vpop.f32.mrb[2].mxu0 }
  0xf7   :  { %v153_v15 = vadd.f32 %v177_v11, %v132_v13  ;;  %v215_v16 = vpop.f32.mrb[3].mxu0 }
  0xf9   :  { %v185_v17 = vpack.c.bf16 %v153_v15, %v152_v14 }
  0xfb   :  { %186 = vst [vmem:[%s285_s3] sm:$0xff] %v185_v17  }

// kernel: _router_device.32
= control target key start
LH: loop header
LB: loop body
LE: loop exit
PB: predicated region body
PF: predicated region fallthrough
CT: control target
= control target key end

     0   :  { %v324_v1 = vmov 0   ;;  %v214_v19 = vlaneseq  ;;  %s411_s1 = inlined_call_operand.vmem [shape: bf16[128,256], index: 1, kind: input, shape index: {}]   ;;  %s412_s0 = inlined_call_operand.vmem [shape: bf16[24,128], index: 0, kind: input, shape index: {}]   ;;  %s413_s2 = inlined_call_operand.vmem [shape: f32[1,256], index: 2, kind: input, shape index: {}]   ;;  %s414_s3 = inlined_call_operand.vmem [shape: bf16[24,256], index: 3, kind: output, shape index: {}]  }
   0x1   :  { %v298_v0 = vld [vmem:[%s411_s1 + $0x4] ss:$8 sps:$4 sm:$0xff]   ;;  %172 = vmatprep.mubr.bf16.mxu0 %v324_v1  ;;  %182 = vmatprep.mubr.bf16.mxu1 %v324_v1  ;;  %v300_v2 = vld [vmem:[%s411_s1] ss:$8 sps:$4 sm:$0xff]   ;;  %v301_v3 = vld [vmem:[%s411_s1 + $0x14] ss:$8 sps:$4 sm:$0xff]  }
   0x2   :  { %140 = vmatprep.subr.bf16.mxu0 %v298_v0  ;;  %281 = vmatprep.subr.bf16.mxu1 %v298_v0  ;;  %v303_v4 = vld [vmem:[%s411_s1 + $0x10] ss:$8 sps:$4 sm:$0xff]   ;;  %v304_v5 = vld [vmem:[%s411_s1 + $0x24] ss:$8 sps:$4 sm:$0xff]   ;;  %v306_v6 = vld [vmem:[%s411_s1 + $0x20] ss:$8 sps:$4 sm:$0xff]  }
   0x3   :  { %141 = vmatpush1.bf16.msra.mxu0 %v300_v2  ;;  %289 = vmatpush1.bf16.msra.mxu1 %v300_v2  ;;  %v307_v7 = vld [vmem:[%s411_s1 + $0x34] ss:$8 sps:$4 sm:$0xff]   ;;  %v309_v8 = vld [vmem:[%s411_s1 + $0x30] ss:$8 sps:$4 sm:$0xff]   ;;  %v310_v9 = vld [vmem:[%s411_s1 + $0x44] ss:$8 sps:$4 sm:$0xff]  }
   0x4   :  { %142 = vmatprep.subr.bf16.mxu0 %v301_v3  ;;  %282 = vmatprep.subr.bf16.mxu1 %v301_v3  ;;  %v312_v10 = vld [vmem:[%s411_s1 + $0x40] ss:$8 sps:$4 sm:$0xff]   ;;  %v313_v11 = vld [vmem:[%s411_s1 + $0x54] ss:$8 sps:$4 sm:$0xff]   ;;  %v315_v12 = vld [vmem:[%s411_s1 + $0x50] ss:$8 sps:$4 sm:$0xff]  }
   0x5   :  { %v316_v13 = vld [vmem:[%s411_s1 + $0x64] ss:$8 sps:$4 sm:$0xff]   ;;  %v318_v14 = vld [vmem:[%s411_s1 + $0x60] ss:$8 sps:$4 sm:$0xff]   ;;  %v319_v15 = vld [vmem:[%s411_s1 + $0x74] ss:$8 sps:$4 sm:$0xff]  }
   0x6   :  { %v321_v16 = vld [vmem:[%s411_s1 + $0x70] ss:$8 sps:$4 sm:$0xff]   ;;  %v322_v17 = vld [vmem:[%s412_s0] sm:$0xff]   ;;  %v323_v18 = vld [vmem:[%s412_s0 + $0x8] ss:$0 sps:$4 sm:$0xff]   ;;  %v215_v20 = vshrl.u32 %v214_v19, 7 }
   0x7   :  { %143 = vmatpush1.bf16.msra.mxu0 %v303_v4  ;;  %290 = vmatpush1.bf16.msra.mxu1 %v303_v4  ;;  %v212_v22 = vld [vmem:[%s413_s2] sm:$0x3] }
   0x8   :  { %144 = vmatprep.subr.bf16.mxu0 %v304_v5  ;;  %283 = vmatprep.subr.bf16.mxu1 %v304_v5  ;;  %v216_v21 = vsub.s32 0, %v215_v20  ;;  %v220_v23 = vsub.s32 1, %v215_v20 }
   0xa   :  { %v217_v24 = vrot.slane %v212_v22, %v216_v21  ;;  %v221_v25 = vrot.slane %v212_v22, %v220_v23 }
   0xb   :  { %145 = vmatpush1.bf16.msra.mxu0 %v306_v6  ;;  %291 = vmatpush1.bf16.msra.mxu1 %v306_v6 }
   0xc   :  { %146 = vmatprep.subr.bf16.mxu0 %v307_v7  ;;  %284 = vmatprep.subr.bf16.mxu1 %v307_v7 }
   0xf   :  { %147 = vmatpush1.bf16.msra.mxu0 %v309_v8  ;;  %292 = vmatpush1.bf16.msra.mxu1 %v309_v8 }
  0x10   :  { %148 = vmatprep.subr.bf16.mxu0 %v310_v9  ;;  %285 = vmatprep.subr.bf16.mxu1 %v310_v9 }
  0x13   :  { %149 = vmatpush1.bf16.msra.mxu0 %v312_v10  ;;  %293 = vmatpush1.bf16.msra.mxu1 %v312_v10 }
  0x14   :  { %150 = vmatprep.subr.bf16.mxu0 %v313_v11  ;;  %286 = vmatprep.subr.bf16.mxu1 %v313_v11 }
  0x17   :  { %151 = vmatpush1.bf16.msra.mxu0 %v315_v12  ;;  %294 = vmatpush1.bf16.msra.mxu1 %v315_v12 }
  0x18   :  { %152 = vmatprep.subr.bf16.mxu0 %v316_v13  ;;  %287 = vmatprep.subr.bf16.mxu1 %v316_v13 }
  0x1b   :  { %153 = vmatpush1.bf16.msra.mxu0 %v318_v14  ;;  %295 = vmatpush1.bf16.msra.mxu1 %v318_v14 }
  0x1c   :  { %154 = vmatprep.subr.bf16.mxu0 %v319_v15  ;;  %288 = vmatprep.subr.bf16.mxu1 %v319_v15 }
  0x1f   :  { %155 = vmatpush1.bf16.msra.mxu0 %v321_v16  ;;  %296 = vmatpush1.bf16.msra.mxu1 %v321_v16 }
  0x22   :  { %173 = vmatmul.mubr.bf16.vlgmr.msra.gmra.mrb[0].mxu0 %v322_v17  ;;  %183 = vmatmul.mubr.bf16.vlgmr.msra.gmra.mrb[0].mxu1 %v323_v18 }
  0xf5   :  { %v174_v26 = vpop.f32.mrb[0].mxu0  ;;  %v184_v27 = vpop.f32.mrb[0].mxu1 }
  0xf6   :  { %v224_v28 = vadd.f32 %v217_v24, %v174_v26  ;;  %v228_v29 = vadd.f32 %v217_v24, %v184_v27  ;;  %v176_v30 = vpop.f32.mrb[1].mxu0  ;;  %v186_v31 = vpop.f32.mrb[1].mxu1 }
  0xf7   :  { %v225_v32 = vadd.f32 %v221_v25, %v176_v30  ;;  %v229_v33 = vadd.f32 %v221_v25, %v186_v31  ;;  %v178_v34 = vpop.f32.mrb[2].mxu0  ;;  %v188_v35 = vpop.f32.mrb[2].mxu1 }
  0xf8   :  { %v226_v36 = vadd.f32 %v217_v24, %v178_v34  ;;  %v180_v37 = vpop.f32.mrb[3].mxu0  ;;  %v189_v38 = vpop.f32.mrb[3].mxu1 }
  0xf9   :  { %v278_v39 = vpack.c.bf16 %v225_v32, %v224_v28  ;;  %v280_v40 = vpack.c.bf16 %v229_v33, %v228_v29  ;;  %v227_v41 = vadd.f32 %v221_v25, %v180_v37 }
  0xfb   :  { %250 = vst [vmem:[%s414_s3] sm:$0xff] %v278_v39  ;;  %252 = vst [vmem:[%s414_s3 + $0x10] sm:$0xff] %v280_v40  ;;  %v279_v42 = vpack.c.bf16 %v227_v41, %v226_v36 }
  0xfd   :  { %251 = vst [vmem:[%s414_s3 + $0x8] sm:$0xff] %v279_v42 }

// kernel: _router_device.33
= control target key start
LH: loop header
LB: loop body
LE: loop exit
PB: predicated region body
PF: predicated region fallthrough
CT: control target
= control target key end

     0   :  { %s704_s15 = smov 0   ;;  %s706_s16 = smov 0   ;;  %s763_s0 = inlined_call_operand.vmem [shape: bf16[4,16,32], index: 0, kind: input, shape index: {}]   ;;  %s764_s1 = inlined_call_operand.vmem [shape: bf16[4,24,32], index: 1, kind: input, shape index: {}]   ;;  %s765_s2 = inlined_call_operand.vmem [shape: bf16[4,24,32], index: 2, kind: input, shape index: {}]   ;;  %s766_s3 = inlined_call_operand.vmem [shape: f32[1,24], index: 3, kind: input, shape index: {}]   ;;  %s767_s4 = inlined_call_operand.vmem [shape: bf16[4,16,32], index: 4, kind: output, shape index: {}]  }
   0x1   :  { %s708_s17 = smov 0  }
   0x2 LB: > { %s26_s18 = sadd.s32 1, %s671_s16  ;;  %p568_p0 = scmp.ge.s32.totalorder %s675_s17, 1  ;;  %s675_s17 = sphi %s708_s17, %s14_s17   ;;  %s671_s16 = sphi %s706_s16, %s769_s16   ;;  %s667_s15 = sphi %s704_s15, %s768_s15  }
   0x3   : > { %p28_p1 = scmp.ge.s32.totalorder %s26_s18, 4  ;;  %p203_p2 = scmp.lt.s32.totalorder %s675_s17, 5 }
   0x5   : > { %s771_s18 = smov (%p28_p1, %s26_s18), 0  ;;  %p204_p3 = pnand %p568_p0, %p203_p2 }
   0x6   : > { %p248_p4 = scmp.lt.s32.totalorder (!%p204_p3), %s667_s15, 3  ;;  %v677_v0 = vmov (!%p204_p3), 0.0   ;;  %vm678_vm0 = vmmov (!%p204_p3), 0   ;;  %vm299_vm1 = vcmask (!%p204_p3), 261120   ;;  %v579_v7 = vld [vmem:[%s766_s3] ss:$0 sm:$0xff] (!%p204_p3) }
   0x7   : > { %207 = sbr.rel (%p204_p3) target bundleno = 788 (0x314), region = 36  ;;  %597 = vmatprep.subr.bf16.mxu0 (!%p204_p3), %v677_v0  ;;  %601 = vmatprep.mubr.msk.bf16.mxu0 (!%p204_p3), %vm678_vm0, %v677_v0  ;;  %vm361_vm2 = vcmask (!%p204_p3), 195584   ;;  %vm397_vm3 = vcmask (!%p204_p3), 1043456   ;;  %vm450_vm4 = vcmask (!%p204_p3), 257024  }
   0x8   : > { %605 = vmatprep.subr.bf16.mxu1 (!%p204_p3), %v677_v0  ;;  %609 = vmatprep.mubr.msk.bf16.mxu1 (!%p204_p3), %vm678_vm0, %v677_v0 }
   0xe   : > { %s773_s15 = smov (!%p248_p4, %s667_s15), 3 }
   0xf   : > { %s613_s19 = smul.u32 12, %s773_s15  ;;  %s587_s20 = sshll.u32 %s773_s15, 3 }
  0x10   : > { %s255_s23 = scalar_lea.vmem %s763_s0, %s587_s20  ;;  %s275_s8 = scalar_lea.vmem %s767_s4, %s587_s20 }
  0x11   : > { %s261_s26 = scalar_lea.vmem %s764_s1, %s613_s19  ;;  %v642_v5 = vld [vmem:[%s255_s23] sm:$0xff]   ;;  %s266_s5 = scalar_lea.vmem %s765_s2, %s613_s19 }
  0x12   : > { %v640_v1 = vld [vmem:[%s261_s26] sm:$0xff]   ;;  %v641_v3 = vld [vmem:[%s261_s26 + $0x8] ss:$0 sps:$4 sm:$0xff]  }
  0x13   : > { %v304_v2 = vsel %vm299_vm1, %v640_v1, 0  ;;  %v307_v4 = vsel %vm299_vm1, %v641_v3, 0  ;;  %v643_v27 = vld [vmem:[%s266_s5] sm:$0xff]   ;;  %v644_v28 = vld [vmem:[%s266_s5 + $0x8] ss:$0 sps:$4 sm:$0xff]  }
  0x14   : > { %598 = vmatpush3.bf16.xpose.msra.mxu0 %v304_v2  ;;  %606 = vmatpush3.bf16.msra.mxu1 %v643_v27  ;;  %v399_v29 = vsel %vm397_vm3, %v644_v28, 0 }
  0x15   : > { %599 = vmatprep.subr.bf16.mxu0 %v677_v0  ;;  %607 = vmatprep.subr.bf16.mxu1 %v677_v0 }
  0x18   : > { %608 = vmatpush3.bf16.msra.mxu1 %v399_v29 }
  0x1c   : > { %600 = vmatpush3.bf16.xpose.msra.mxu0 %v307_v4 }
  0x23   : > { %602 = vmatmul.mubr.msk.bf16.vlgmr.msra.gmra.mrb[0].mxu0 %vm299_vm1, %v642_v5 }
  0xf6   : > { %v343_v6 = vpop.f32.mrb[0].mxu0 }
  0xf7   : > { %v350_v8 = vmul.f32 0.17677669, %v343_v6  ;;  %v603_v9 = vpop.f32.mrb[1].mxu0 }
  0xf8   : > { %v346_v10 = vpop.f32.mrb[2].mxu0 }
  0xf9   : > { %v351_v11 = vmul.f32 0.17677669, %v346_v10  ;;  %v604_v12 = vpop.f32.mrb[3].mxu0  ;;  %v359_v13 = vadd.f32 %v579_v7, %v350_v8 }
  0xfb   : > { %v362_v14 = vsel %vm361_vm2, %v359_v13, -inf  ;;  %v360_v15 = vadd.f32 %v579_v7, %v351_v11 }
  0xfc   : > { %363 = vmax.xlane.f32.xlu0 %v362_v14 }
  0xfd   : > { %v365_v16 = vsel %vm361_vm2, %v360_v15, -inf }
 0x100   : > { %366 = vmax.xlane.f32.xlu0 %v365_v16 }
 0x189   : > { %v364_v17 = vpop.xlane.xlu0 %363 }
 0x18a   : > { %v368_v18 = vsub.f32 %v359_v13, %v364_v17 }
 0x18c   : > { %v370_v19 = vmul.f32 1.442695, %v368_v18 }
 0x18d   : > { %v367_v20 = vpop.xlane.xlu0 %366 }
 0x18e   : > { %645 = vpow2.f32 %v370_v19  ;;  %v369_v21 = vsub.f32 %v360_v15, %v367_v20 }
 0x190   : > { %v372_v22 = vmul.f32 1.442695, %v369_v21 }
 0x192   : > { %647 = vpow2.f32 %v372_v22 }
 0x198   : > { %v646_v23 = vpop.eup %645 }
 0x199   : > { %v374_v24 = vsel %vm361_vm2, %v646_v23, 0.0 }
 0x19a   : > { %375 = vadd.xlane.f32.xlu1 %v374_v24 }
 0x19c   : > { %v648_v25 = vpop.eup %647 }
 0x19d   : > { %v377_v26 = vsel %vm361_vm2, %v648_v25, 0.0 }
 0x19e   : > { %378 = vadd.xlane.f32.xlu1 %v377_v26 }
 0x227   : > { %v376_v30 = vpop.xlane.xlu1 %375 }
 0x228   : > { %649 = vrcp.f32 %v376_v30 }
 0x22b   : > { %v379_v31 = vpop.xlane.xlu1 %378 }
 0x22c   : > { %651 = vrcp.f32 %v379_v31 }
 0x232   : > { %v650_v32 = vpop.eup %649 }
 0x233   : > { %v382_v34 = vmul.f32 %v650_v32, %v646_v23 }
 0x236   : > { %v652_v33 = vpop.eup %651 }
 0x237   : > { %v383_v35 = vmul.f32 %v652_v33, %v648_v25 }
 0x239   : > { %v384_v36 = vpack.c.bf16 %v383_v35, %v382_v34 }
 0x23b   : > { %610 = vmatmul.mubr.msk.bf16.vlgmr.msra.gmra.mrb[0].mxu1 %vm361_vm2, %v384_v36 }
 0x30e   : > { %v435_v37 = vpop.f32.mrb[0].mxu1 }
 0x30f   : > { %v589_v38 = vpack.c.bf16 %v435_v37, %v435_v37  ;;  %v611_v39 = vpop.f32.mrb[1].mxu1 }
 0x310   : > { %v438_v40 = vpop.f32.mrb[2].mxu1 }
 0x311   : > { %451 = vst.msk [vmem:[%s275_s8] sm:$0xf] %vm450_vm4, %v589_v38  ;;  %v590_v41 = vpack.c.bf16 %v438_v40, %v438_v40  ;;  %v612_v42 = vpop.f32.mrb[3].mxu1 }
 0x313   : > { %452 = vst.msk [vmem:[%s275_s8 + $0x4] sm:$0xf] %vm450_vm4, %v590_v41 }
 0x314 PF: > { %s14_s17 = sadd.s32 1, %s675_s17   ;;  %s768_s15 = smov %s671_s16 }
 0x315   : > { %p11_p5 = scmp.ge.s32.totalorder %s14_s17, 6   ;;  %s769_s16 = smov %s771_s18 }
 0x317   :  { %13 = sbr.rel (!%p11_p5) target bundleno = 2 (0x2), region = 72 }

// kernel: _router_device.22
= control target key start
LH: loop header
LB: loop body
LE: loop exit
PB: predicated region body
PF: predicated region fallthrough
CT: control target
= control target key end

     0   :  { %v240_v1 = vmov 0   ;;  %v172_v18 = vlaneseq  ;;  %s318_s1 = inlined_call_operand.vmem [shape: bf16[128,256], index: 1, kind: input, shape index: {}]   ;;  %s319_s0 = inlined_call_operand.vmem [shape: bf16[8,128], index: 0, kind: input, shape index: {}]   ;;  %s320_s2 = inlined_call_operand.vmem [shape: f32[1,256], index: 2, kind: input, shape index: {}]   ;;  %s321_s3 = inlined_call_operand.vmem [shape: bf16[8,256], index: 3, kind: output, shape index: {}]  }
   0x1   :  { %v216_v0 = vld [vmem:[%s318_s1 + $0x4] ss:$8 sps:$4 sm:$0xff]   ;;  %152 = vmatprep.mubr.bf16.mxu0 %v240_v1  ;;  %v218_v2 = vld [vmem:[%s318_s1] ss:$8 sps:$4 sm:$0xff]   ;;  %v219_v3 = vld [vmem:[%s318_s1 + $0x14] ss:$8 sps:$4 sm:$0xff]  }
   0x2   :  { %120 = vmatprep.subr.bf16.mxu0 %v216_v0  ;;  %v221_v4 = vld [vmem:[%s318_s1 + $0x10] ss:$8 sps:$4 sm:$0xff]   ;;  %v222_v5 = vld [vmem:[%s318_s1 + $0x24] ss:$8 sps:$4 sm:$0xff]   ;;  %v224_v6 = vld [vmem:[%s318_s1 + $0x20] ss:$8 sps:$4 sm:$0xff]  }
   0x3   :  { %121 = vmatpush1.bf16.msra.mxu0 %v218_v2  ;;  %v225_v7 = vld [vmem:[%s318_s1 + $0x34] ss:$8 sps:$4 sm:$0xff]   ;;  %v227_v8 = vld [vmem:[%s318_s1 + $0x30] ss:$8 sps:$4 sm:$0xff]   ;;  %v228_v9 = vld [vmem:[%s318_s1 + $0x44] ss:$8 sps:$4 sm:$0xff]  }
   0x4   :  { %122 = vmatprep.subr.bf16.mxu0 %v219_v3  ;;  %v230_v10 = vld [vmem:[%s318_s1 + $0x40] ss:$8 sps:$4 sm:$0xff]   ;;  %v231_v11 = vld [vmem:[%s318_s1 + $0x54] ss:$8 sps:$4 sm:$0xff]   ;;  %v233_v12 = vld [vmem:[%s318_s1 + $0x50] ss:$8 sps:$4 sm:$0xff]  }
   0x5   :  { %v234_v13 = vld [vmem:[%s318_s1 + $0x64] ss:$8 sps:$4 sm:$0xff]   ;;  %v236_v14 = vld [vmem:[%s318_s1 + $0x60] ss:$8 sps:$4 sm:$0xff]   ;;  %v237_v15 = vld [vmem:[%s318_s1 + $0x74] ss:$8 sps:$4 sm:$0xff]  }
   0x6   :  { %v239_v16 = vld [vmem:[%s318_s1 + $0x70] ss:$8 sps:$4 sm:$0xff]   ;;  %v23_v17 = vld [vmem:[%s319_s0] sm:$0xf]  ;;  %v173_v19 = vshrl.u32 %v172_v18, 7 }
   0x7   :  { %123 = vmatpush1.bf16.msra.mxu0 %v221_v4  ;;  %v170_v21 = vld [vmem:[%s320_s2] sm:$0x3] }
   0x8   :  { %124 = vmatprep.subr.bf16.mxu0 %v222_v5  ;;  %v174_v20 = vsub.s32 0, %v173_v19  ;;  %v178_v22 = vsub.s32 1, %v173_v19 }
   0xa   :  { %v175_v23 = vrot.slane %v170_v21, %v174_v20  ;;  %v179_v24 = vrot.slane %v170_v21, %v178_v22 }
   0xb   :  { %125 = vmatpush1.bf16.msra.mxu0 %v224_v6 }
   0xc   :  { %126 = vmatprep.subr.bf16.mxu0 %v225_v7 }
   0xf   :  { %127 = vmatpush1.bf16.msra.mxu0 %v227_v8 }
  0x10   :  { %128 = vmatprep.subr.bf16.mxu0 %v228_v9 }
  0x13   :  { %129 = vmatpush1.bf16.msra.mxu0 %v230_v10 }
  0x14   :  { %130 = vmatprep.subr.bf16.mxu0 %v231_v11 }
  0x17   :  { %131 = vmatpush1.bf16.msra.mxu0 %v233_v12 }
  0x18   :  { %132 = vmatprep.subr.bf16.mxu0 %v234_v13 }
  0x1b   :  { %133 = vmatpush1.bf16.msra.mxu0 %v236_v14 }
  0x1c   :  { %134 = vmatprep.subr.bf16.mxu0 %v237_v15 }
  0x1f   :  { %135 = vmatpush1.bf16.msra.mxu0 %v239_v16 }
  0x22   :  { %153 = vmatmul.mubr.bf16.vlgmr.msra.gmra.mrb[0].mxu0 %v23_v17 }
  0xf5   :  { %v154_v25 = vpop.f32.mrb[0].mxu0 }
  0xf6   :  { %v182_v26 = vadd.f32 %v175_v23, %v154_v25  ;;  %v156_v27 = vpop.f32.mrb[1].mxu0 }
  0xf7   :  { %v183_v28 = vadd.f32 %v179_v24, %v156_v27  ;;  %v158_v29 = vpop.f32.mrb[2].mxu0 }
  0xf8   :  { %v159_v30 = vpop.f32.mrb[3].mxu0 }
  0xf9   :  { %v214_v31 = vpack.c.bf16 %v183_v28, %v182_v26 }
  0xfb   :  { %192 = vst [vmem:[%s321_s3] sm:$0xff] %v214_v31 }

// kernel: _router_device.34
= control target key start
LH: loop header
LB: loop body
LE: loop exit
PB: predicated region body
PF: predicated region fallthrough
CT: control target
= control target key end

     0   :  { %v210_v0 = vmov 0.0   ;;  %vm211_vm0 = vmmov 0   ;;  %s268_s1 = inlined_call_operand.vmem [shape: bf16[128,128], index: 1, kind: input, shape index: {}]   ;;  %s269_s0 = inlined_call_operand.vmem [shape: bf16[16,128], index: 0, kind: input, shape index: {}]   ;;  %s270_s2 = inlined_call_operand.vmem [shape: f32[1,128], index: 2, kind: input, shape index: {}]   ;;  %s271_s3 = inlined_call_operand.vmem [shape: f32[16,128], index: 3, kind: output, shape index: {}]  }
   0x1   :  { %179 = vmatprep.subr.bf16.mxu0 %v210_v0  ;;  %v201_v1 = vld [vmem:[%s268_s1] sm:$0xff]   ;;  %195 = vmatprep.mubr.msk.bf16.mxu0 %vm211_vm0, %v210_v0  ;;  %v202_v2 = vld [vmem:[%s268_s1 + $0x8] sm:$0xff]   ;;  %v203_v3 = vld [vmem:[%s268_s1 + $0x10] sm:$0xff]  }
   0x2   :  { %180 = vmatpush3.bf16.msra.mxu0 %v201_v1  ;;  %v204_v4 = vld [vmem:[%s268_s1 + $0x18] sm:$0xff]   ;;  %v205_v5 = vld [vmem:[%s268_s1 + $0x20] sm:$0xff]   ;;  %v206_v6 = vld [vmem:[%s268_s1 + $0x28] sm:$0xff]  }
   0x3   :  { %181 = vmatprep.subr.bf16.mxu0 %v210_v0  ;;  %v207_v7 = vld [vmem:[%s268_s1 + $0x30] sm:$0xff]   ;;  %v208_v8 = vld [vmem:[%s268_s1 + $0x38] sm:$0xff]   ;;  %v209_v9 = vld [vmem:[%s269_s0] sm:$0xff]  }
   0x4   :  { %v169_v10 = vld [vmem:[%s270_s2] ss:$0 sm:$0xff] }
   0x6   :  { %182 = vmatpush3.bf16.msra.mxu0 %v202_v2 }
   0x7   :  { %183 = vmatprep.subr.bf16.mxu0 %v210_v0 }
   0xa   :  { %184 = vmatpush3.bf16.msra.mxu0 %v203_v3 }
   0xb   :  { %185 = vmatprep.subr.bf16.mxu0 %v210_v0 }
   0xe   :  { %186 = vmatpush3.bf16.msra.mxu0 %v204_v4 }
   0xf   :  { %187 = vmatprep.subr.bf16.mxu0 %v210_v0 }
  0x12   :  { %188 = vmatpush3.bf16.msra.mxu0 %v205_v5 }
  0x13   :  { %189 = vmatprep.subr.bf16.mxu0 %v210_v0 }
  0x16   :  { %190 = vmatpush3.bf16.msra.mxu0 %v206_v6 }
  0x17   :  { %191 = vmatprep.subr.bf16.mxu0 %v210_v0 }
  0x1a   :  { %192 = vmatpush3.bf16.msra.mxu0 %v207_v7 }
  0x1b   :  { %193 = vmatprep.subr.bf16.mxu0 %v210_v0 }
  0x1e   :  { %194 = vmatpush3.bf16.msra.mxu0 %v208_v8 }
  0x21   :  { %196 = vmatmul.mubr.bf16.vlgmr.msra.gmra.mrb[0].mxu0 %v209_v9 }
  0xf4   :  { %v129_v11 = vpop.f32.mrb[0].mxu0 }
  0xf5   :  { %v152_v12 = vadd.f32 %v169_v10, %v129_v11  ;;  %v197_v13 = vpop.f32.mrb[1].mxu0 }
  0xf6   :  { %v132_v14 = vpop.f32.mrb[2].mxu0 }
  0xf7   :  { %154 = vst [vmem:[%s271_s3] sm:$0xff] %v152_v12  ;;  %v153_v15 = vadd.f32 %v169_v10, %v132_v14  ;;  %v198_v16 = vpop.f32.mrb[3].mxu0 }
  0xf9   :  { %155 = vst [vmem:[%s271_s3 + $0x8] sm:$0xff] %v153_v15 }

// kernel: _router_device.23
= control target key start
LH: loop header
LB: loop body
LE: loop exit
PB: predicated region body
PF: predicated region fallthrough
CT: control target
= control target key end

     0   :  { %s659_s15 = smov 0   ;;  %s661_s16 = smov 0   ;;  %s718_s0 = inlined_call_operand.vmem [shape: bf16[4,16,32], index: 0, kind: input, shape index: {}]   ;;  %s719_s1 = inlined_call_operand.vmem [shape: bf16[4,8,32], index: 1, kind: input, shape index: {}]   ;;  %s720_s2 = inlined_call_operand.vmem [shape: bf16[4,8,32], index: 2, kind: input, shape index: {}]   ;;  %s721_s3 = inlined_call_operand.vmem [shape: f32[1,8], index: 3, kind: input, shape index: {}]   ;;  %s722_s4 = inlined_call_operand.vmem [shape: bf16[4,16,32], index: 4, kind: output, shape index: {}]  }
   0x1   :  { %s663_s17 = smov 0  }
   0x2 LB: > { %s26_s18 = sadd.s32 1, %s626_s16  ;;  %p538_p0 = scmp.ge.s32.totalorder %s630_s17, 1  ;;  %s630_s17 = sphi %s663_s17, %s14_s17   ;;  %s626_s16 = sphi %s661_s16, %s724_s16   ;;  %s622_s15 = sphi %s659_s15, %s723_s15  }
   0x3   : > { %p28_p1 = scmp.ge.s32.totalorder %s26_s18, 4  ;;  %p201_p2 = scmp.lt.s32.totalorder %s630_s17, 5 }
   0x5   : > { %s726_s18 = smov (%p28_p1, %s26_s18), 0  ;;  %p202_p3 = pnand %p538_p0, %p201_p2 }
   0x6   : > { %p244_p4 = scmp.lt.s32.totalorder (!%p202_p3), %s622_s15, 3  ;;  %v632_v0 = vmov (!%p202_p3), 0.0   ;;  %vm633_vm0 = vmmov (!%p202_p3), 0   ;;  %vm281_vm1 = vcmask (!%p202_p3), 261120   ;;  %v547_v5 = vld [vmem:[%s721_s3] ss:$0 sm:$0xff] (!%p202_p3) }
   0x7   : > { %205 = sbr.rel (%p202_p3) target bundleno = 779 (0x30b), region = 36  ;;  %561 = vmatprep.subr.bf16.mxu0 (!%p202_p3), %v632_v0  ;;  %563 = vmatprep.mubr.msk.bf16.mxu0 (!%p202_p3), %vm633_vm0, %v632_v0  ;;  %vm340_vm2 = vcmask (!%p202_p3), 64512   ;;  %vm367_vm3 = vcmask (!%p202_p3), 1043456   ;;  %vm420_vm4 = vcmask (!%p202_p3), 257024  }
   0x8   : > { %567 = vmatprep.subr.bf16.mxu1 (!%p202_p3), %v632_v0  ;;  %569 = vmatprep.mubr.msk.bf16.mxu1 (!%p202_p3), %vm633_vm0, %v632_v0 }
   0xe   : > { %s728_s15 = smov (!%p244_p4, %s622_s15), 3 }
   0xf   : > { %s553_s19 = sshll.u32 %s728_s15, 3  ;;  %s541_s20 = sshll.u32 %s728_s15, 2 }
  0x10   : > { %s251_s23 = scalar_lea.vmem %s718_s0, %s553_s19  ;;  %s256_s26 = scalar_lea.vmem %s719_s1, %s541_s20 }
  0x11   : > { %v274_v1 = vld [vmem:[%s256_s26] sm:$0xf]  ;;  %s260_s5 = scalar_lea.vmem %s720_s2, %s541_s20  ;;  %s269_s8 = scalar_lea.vmem %s722_s4, %s553_s19 }
  0x12   : > { %v286_v2 = vsel %vm281_vm1, %v274_v1, 0  ;;  %v599_v3 = vld [vmem:[%s251_s23] sm:$0xff]  }
  0x13   : > { %562 = vmatpush3.bf16.xpose.msra.mxu0 %v286_v2  ;;  %v275_v25 = vld [vmem:[%s260_s5] sm:$0xf] }
  0x14   : > { %v369_v26 = vsel %vm367_vm3, %v275_v25, 0 }
  0x15   : > { %568 = vmatpush3.bf16.msra.mxu1 %v369_v26 }
  0x1a   : > { %564 = vmatmul.mubr.msk.bf16.vlgmr.msra.gmra.mrb[0].mxu0 %vm281_vm1, %v599_v3 }
  0xed   : > { %v322_v4 = vpop.f32.mrb[0].mxu0 }
  0xee   : > { %v329_v6 = vmul.f32 0.17677669, %v322_v4  ;;  %v565_v7 = vpop.f32.mrb[1].mxu0 }
  0xef   : > { %v325_v8 = vpop.f32.mrb[2].mxu0 }
  0xf0   : > { %v330_v9 = vmul.f32 0.17677669, %v325_v8  ;;  %v566_v10 = vpop.f32.mrb[3].mxu0  ;;  %v338_v11 = vadd.f32 %v547_v5, %v329_v6 }
  0xf2   : > { %v341_v12 = vsel %vm340_vm2, %v338_v11, -inf  ;;  %v339_v13 = vadd.f32 %v547_v5, %v330_v9 }
  0xf3   : > { %342 = vmax.xlane.f32.xlu0 %v341_v12 }
  0xf4   : > { %v344_v14 = vsel %vm340_vm2, %v339_v13, -inf }
  0xf7   : > { %345 = vmax.xlane.f32.xlu0 %v344_v14 }
 0x180   : > { %v343_v15 = vpop.xlane.xlu0 %342 }
 0x181   : > { %v347_v16 = vsub.f32 %v338_v11, %v343_v15 }
 0x183   : > { %v349_v17 = vmul.f32 1.442695, %v347_v16 }
 0x184   : > { %v346_v18 = vpop.xlane.xlu0 %345 }
 0x185   : > { %600 = vpow2.f32 %v349_v17  ;;  %v348_v19 = vsub.f32 %v339_v13, %v346_v18 }
 0x187   : > { %v351_v20 = vmul.f32 1.442695, %v348_v19 }
 0x189   : > { %602 = vpow2.f32 %v351_v20 }
 0x18f   : > { %v601_v21 = vpop.eup %600 }
 0x190   : > { %v353_v22 = vsel %vm340_vm2, %v601_v21, 0.0 }
 0x191   : > { %354 = vadd.xlane.f32.xlu1 %v353_v22 }
 0x193   : > { %v603_v23 = vpop.eup %602 }
 0x194   : > { %v356_v24 = vsel %vm340_vm2, %v603_v23, 0.0 }
 0x195   : > { %357 = vadd.xlane.f32.xlu1 %v356_v24 }
 0x21e   : > { %v355_v27 = vpop.xlane.xlu1 %354 }
 0x21f   : > { %604 = vrcp.f32 %v355_v27 }
 0x222   : > { %v358_v28 = vpop.xlane.xlu1 %357 }
 0x223   : > { %606 = vrcp.f32 %v358_v28 }
 0x229   : > { %v605_v29 = vpop.eup %604 }
 0x22a   : > { %v361_v31 = vmul.f32 %v605_v29, %v601_v21 }
 0x22d   : > { %v607_v30 = vpop.eup %606 }
 0x22e   : > { %v362_v32 = vmul.f32 %v607_v30, %v603_v23 }
 0x230   : > { %v363_v33 = vpack.c.bf16 %v362_v32, %v361_v31 }
 0x232   : > { %570 = vmatmul.mubr.msk.bf16.vlgmr.msra.gmra.mrb[0].mxu1 %vm340_vm2, %v363_v33 }
 0x305   : > { %v405_v34 = vpop.f32.mrb[0].mxu1 }
 0x306   : > { %v555_v35 = vpack.c.bf16 %v405_v34, %v405_v34  ;;  %v571_v36 = vpop.f32.mrb[1].mxu1 }
 0x307   : > { %v408_v37 = vpop.f32.mrb[2].mxu1 }
 0x308   : > { %421 = vst.msk [vmem:[%s269_s8] sm:$0xf] %vm420_vm4, %v555_v35  ;;  %v556_v38 = vpack.c.bf16 %v408_v37, %v408_v37  ;;  %v572_v39 = vpop.f32.mrb[3].mxu1 }
 0x30a   : > { %422 = vst.msk [vmem:[%s269_s8 + $0x4] sm:$0xf] %vm420_vm4, %v556_v38 }
 0x30b PF: > { %s14_s17 = sadd.s32 1, %s630_s17   ;;  %s723_s15 = smov %s626_s16 }
 0x30c   : > { %p11_p5 = scmp.ge.s32.totalorder %s14_s17, 6   ;;  %s724_s16 = smov %s726_s18 }
 0x30e   :  { %13 = sbr.rel (!%p11_p5) target bundleno = 2 (0x2), region = 72 }

// kernel: _router_device.35
= control target key start
LH: loop header
LB: loop body
LE: loop exit
PB: predicated region body
PF: predicated region fallthrough
CT: control target
= control target key end

     0   :  { %s310_s1 = inlined_call_operand.vmem [shape: bf16[128,128], index: 1, kind: input, shape index: {}]   ;;  %s311_s0 = inlined_call_operand.vmem [shape: bf16[32,128], index: 0, kind: input, shape index: {}]   ;;  %s312_s2 = inlined_call_operand.vmem [shape: f32[1,128], index: 2, kind: input, shape index: {}]   ;;  %s313_s3 = inlined_call_operand.vmem [shape: f32[32,128], index: 3, kind: output, shape index: {}]  }
   0x1   :  { %v235_v0 = vld [vmem:[%s310_s1] sm:$0xff]   ;;  %v236_v1 = vld [vmem:[%s310_s1 + $0x8] sm:$0xff]   ;;  %v237_v2 = vld [vmem:[%s310_s1 + $0x10] sm:$0xff]  }
   0x2   :  { %215 = vmatprep.subr.bf16.mxu0 %v235_v0  ;;  %v238_v3 = vld [vmem:[%s310_s1 + $0x18] sm:$0xff]   ;;  %v243_v4 = vld [vmem:[%s311_s0] sm:$0xff]   ;;  %v240_v6 = vld [vmem:[%s310_s1 + $0x28] sm:$0xff]  }
   0x3   :  { %216 = vmatpush3.bf16.msra.mxu0 %v235_v0  ;;  %231 = vmatprep.mubr.bf16.mxu0 %v243_v4  ;;  %v239_v5 = vld [vmem:[%s310_s1 + $0x20] sm:$0xff]   ;;  %v241_v7 = vld [vmem:[%s310_s1 + $0x30] sm:$0xff]   ;;  %v242_v8 = vld [vmem:[%s310_s1 + $0x38] sm:$0xff]  }
   0x4   :  { %217 = vmatprep.subr.bf16.mxu0 %v236_v1  ;;  %v244_v9 = vld [vmem:[%s311_s0 + $0x8] sm:$0xff]   ;;  %v204_v10 = vld [vmem:[%s312_s2] ss:$0 sm:$0xff] }
   0x7   :  { %218 = vmatpush3.bf16.msra.mxu0 %v236_v1 }
   0x8   :  { %219 = vmatprep.subr.bf16.mxu0 %v237_v2 }
   0xb   :  { %220 = vmatpush3.bf16.msra.mxu0 %v237_v2 }
   0xc   :  { %221 = vmatprep.subr.bf16.mxu0 %v238_v3 }
   0xf   :  { %222 = vmatpush3.bf16.msra.mxu0 %v238_v3 }
  0x10   :  { %223 = vmatprep.subr.bf16.mxu0 %v239_v5 }
  0x13   :  { %224 = vmatpush3.bf16.msra.mxu0 %v239_v5 }
  0x14   :  { %225 = vmatprep.subr.bf16.mxu0 %v240_v6 }
  0x17   :  { %226 = vmatpush3.bf16.msra.mxu0 %v240_v6 }
  0x18   :  { %227 = vmatprep.subr.bf16.mxu0 %v241_v7 }
  0x1b   :  { %228 = vmatpush3.bf16.msra.mxu0 %v241_v7 }
  0x1c   :  { %229 = vmatprep.subr.bf16.mxu0 %v242_v8 }
  0x1f   :  { %230 = vmatpush3.bf16.msra.mxu0 %v242_v8 }
  0x22   :  { %232 = vmatmul.mubr.bf16.vlgmr.msra.gmra.mrb[0].mxu0 %v244_v9 }
  0xf5   :  { %v233_v11 = vpop.f32.mrb[0].mxu0 }
  0xf6   :  { %v180_v12 = vadd.f32 %v233_v11, %v204_v10  ;;  %v141_v13 = vpop.f32.mrb[1].mxu0 }
  0xf7   :  { %v178_v14 = vadd.f32 %v204_v10, %v141_v13  ;;  %v234_v15 = vpop.f32.mrb[2].mxu0 }
  0xf8   :  { %v184_v16 = vmax.f32 %v180_v12, 0.0  ;;  %v181_v17 = vadd.f32 %v234_v15, %v204_v10  ;;  %v144_v18 = vpop.f32.mrb[3].mxu0 }
  0xf9   :  { %v182_v19 = vmax.f32 %v178_v14, 0.0  ;;  %v179_v20 = vadd.f32 %v204_v10, %v144_v18 }
  0xfa   :  { %188 = vst [vmem:[%s313_s3 + $0x10] sm:$0xff] %v184_v16  ;;  %v185_v21 = vmax.f32 %v181_v17, 0.0 }
  0xfb   :  { %186 = vst [vmem:[%s313_s3] sm:$0xff] %v182_v19  ;;  %v183_v22 = vmax.f32 %v179_v20, 0.0 }
  0xfc   :  { %189 = vst [vmem:[%s313_s3 + $0x18] sm:$0xff] %v185_v21 }
  0xfd   :  { %187 = vst [vmem:[%s313_s3 + $0x8] sm:$0xff] %v183_v22 }

// kernel: _router_device.36
= control target key start
LH: loop header
LB: loop body
LE: loop exit
PB: predicated region body
PF: predicated region fallthrough
CT: control target
= control target key end

     0   :  { %vm50_vm0 = vcmask 7168   ;;  %s111_s0 = inlined_call_operand.vmem [shape: f32[32,128], index: 0, kind: input, shape index: {}]   ;;  %s112_s1 = inlined_call_operand.vmem [shape: f32[1,128], index: 1, kind: input, shape index: {}]   ;;  %s113_s2 = inlined_call_operand.<no memory space> [shape: f32[1,1], index: 2, kind: input, shape index: {}]   ;;  %s114_s3 = inlined_call_operand.vmem [shape: f32[32,1], index: 3, kind: output, shape index: {}]  }
   0x1   :  { %v18_v0 = vld [vmem:[%s111_s0 + $0x10] sm:$0xff]  ;;  %v59_v1 = vld [vmem:[%s112_s1] ss:$0 sm:$0xff]  ;;  %v8_v3 = vstv %s113_s2  ;;  %v19_v6 = vld [vmem:[%s111_s0 + $0x18] sm:$0xff] }
   0x2   :  { %v16_v2 = vld [vmem:[%s111_s0] sm:$0xff]  ;;  %v29_v4 = vmul.f32 %v59_v1, %v18_v0  ;;  %v17_v7 = vld [vmem:[%s111_s0 + $0x8] sm:$0xff]  ;;  %9 = vst [vmem:[#allocation2] sm:$0x1] %v8_v3  ;;  %v30_v8 = vmul.f32 %v59_v1, %v19_v6 }
   0x3   :  { %v27_v5 = vmul.f32 %v59_v1, %v16_v2  ;;  %v28_v9 = vmul.f32 %v59_v1, %v17_v7 }
   0x4   :  { %35 = vadd.xlane.f32.xlu1 %v29_v4 }
   0x5   :  { %31 = vadd.xlane.f32.xlu0 %v27_v5 }
   0x8   :  { %37 = vadd.xlane.f32.xlu1 %v30_v8 }
   0x9   :  { %33 = vadd.xlane.f32.xlu0 %v28_v9  ;;  %v60_v10 = vld [vmem:[#allocation2] ss:$0 sm:$0xff] }
  0x91   :  { %v36_v11 = vpop.xlane.xlu1 %35 }
  0x92   :  { %v32_v12 = vpop.xlane.xlu0 %31  ;;  %v48_v13 = vadd.f32 %v60_v10, %v36_v11 }
  0x93   :  { %v46_v14 = vadd.f32 %v60_v10, %v32_v12 }
  0x94   :  { %53 = vst.msk [vmem:[%s114_s3 + $0x10] sm:$0xff] %vm50_vm0, %v48_v13 }
  0x95   :  { %51 = vst.msk [vmem:[%s114_s3] sm:$0xff] %vm50_vm0, %v46_v14  ;;  %v38_v15 = vpop.xlane.xlu1 %37 }
  0x96   :  { %v34_v16 = vpop.xlane.xlu0 %33  ;;  %v49_v17 = vadd.f32 %v60_v10, %v38_v15 }
  0x97   :  { %v47_v18 = vadd.f32 %v60_v10, %v34_v16 }
  0x98   :  { %54 = vst.msk [vmem:[%s114_s3 + $0x18] sm:$0xff] %vm50_vm0, %v49_v17 }
  0x99   :  { %52 = vst.msk [vmem:[%s114_s3 + $0x8] sm:$0xff] %vm50_vm0, %v47_v18 }

// kernel: _router_device.41
= control target key start
LH: loop header
LB: loop body
LE: loop exit
PB: predicated region body
PF: predicated region fallthrough
CT: control target
= control target key end

     0   :  { %vm32_vm0 = vcmask 122880   ;;  %v585_v0 = vmov 0.0   ;;  %v586_v1 = vmov -1e+30   ;;  %vm587_vm1 = vmmov 0   ;;  %s705_s0 = inlined_call_operand.vmem [shape: f32[16,128], index: 0, kind: input, shape index: {}, may-alias: {0,3}]   ;;  %s706_s1 = inlined_call_operand.vmem [shape: f32[16,1], index: 1, kind: input, shape index: {}]   ;;  %s707_s2 = inlined_call_operand.vmem [shape: bf16[16,128], index: 2, kind: input, shape index: {}]   ;;  %s708_s3 = inlined_call_operand.vmem [shape: f32[16,128], index: 3, kind: input, shape index: {}, may-alias: {0,3}]   ;;  %s709_s4 = inlined_call_operand.vmem [shape: f32[1,16], index: 4, kind: input, shape index: {}]   ;;  %s710_s5 = inlined_call_operand.vmem [shape: f32[1,16], index: 5, kind: input, shape index: {}]   ;;  %s711_s6 = inlined_call_operand.vmem [shape: f32[1,16], index: 6, kind: input, shape index: {}]   ;;  %s712_s7 = inlined_call_operand.hbm [shape: f32[16,128], index: 7, kind: output, shape index: {}]  }
   0x1   :  { %33 = vst.msk [vmem:[#allocation2] sm:$0x1] %vm32_vm0, %v585_v0  ;;  %36 = vst.msk [vmem:[#allocation4] sm:$0x1] %vm32_vm0, %v586_v1  ;;  %514 = vmatprep.subr.bf16.mxu0 %v585_v0  ;;  %v540_v2 = vld [vmem:[%s707_s2] sm:$0xff]   ;;  %516 = vmatprep.mubr.msk.bf16.mxu0 %vm587_vm1, %v585_v0  ;;  %v38_v4 = vld [vmem:[%s705_s0 + $0x8] sm:$0xff] }
   0x2   :  { %v37_v3 = vld [vmem:[%s705_s0] sm:$0xff] }
   0x3   :  { %v41_v5 = vmul.f32 %v37_v3, %v37_v3 }
   0x4   :  { %12 = vsyncpa [#allocation6], 0  ;;  %515 = vmatpush3.bf16.xpose.msra.mxu0 %v540_v2  ;;  %v65_v6 = vpack.c.bf16 %v38_v4, %v37_v3  ;;  %v42_v7 = vmul.f32 %v38_v4, %v38_v4  ;;  %v504_v24 = vld [vmem:[%s711_s6] ss:$0 sm:$0xff]  ;;  %vm135_vm6 = vcmask 130048   ;;  %v142_v38 = vlaneseq  ;;  %v40_v59 = vld [vmem:[%s706_s1 + $0x8] sm:$0xff] }
   0x5   :  { %43 = vadd.xlane.f32.xlu0 %v41_v5  ;;  %v505_v29 = vld [vmem:[%s709_s4] ss:$0 sm:$0xff]  ;;  %v588_v50 = vmov 0  }
   0x6   :  { %528 = vmatprep.subr.bf16.mxu1 %v65_v6  ;;  %v143_v39 = vand.u32 127, %v142_v38  ;;  %538 = vset.pattern.permute.xlu0 %v588_v50  ;;  %v39_v60 = vld [vmem:[%s706_s1] sm:$0xff] }
   0x7   :  { %530 = vmatpush3.bf16.msra.mxu1 %v65_v6  ;;  %539 = vset.pattern.permute.xlu1 %v588_v50 }
   0x9   :  { %45 = vadd.xlane.f32.xlu0 %v42_v7 }
   0xb   :  { %517 = vmatmul.mubr.bf16.vlgmr.msra.gmra.mrb[0].mxu0 %v65_v6 }
  0x92   :  { %v44_v8 = vpop.xlane.xlu0 %43 }
  0x93   :  { %541 = vrsqrt.f32 %v44_v8  ;;  %vm49_vm2 = vcmp.eq.f32.partialorder %v44_v8, inf  ;;  %v52_v14 = vand.u32 2147483648, %v44_v8  ;;  %vm51_vm4 = vcmp.eq.f32.partialorder %v44_v8, 0.0 }
  0x96   :  { %v46_v9 = vpop.xlane.xlu0 %45 }
  0x97   :  { %543 = vrsqrt.f32 %v46_v9  ;;  %vm56_vm3 = vcmp.eq.f32.partialorder %v46_v9, inf  ;;  %v59_v16 = vand.u32 2147483648, %v46_v9  ;;  %vm58_vm5 = vcmp.eq.f32.partialorder %v46_v9, 0.0 }
  0x9d   :  { %v542_v10 = vpop.eup %541 }
  0x9e   :  { %v48_v12 = vmul.f32 %v542_v10, %v44_v8 }
  0xa0   :  { %v50_v15 = vsel %vm49_vm2, %v44_v8, %v48_v12 }
  0xa1   :  { %v544_v11 = vpop.eup %543  ;;  %v646_v18 = vsel %vm51_vm4, %v52_v14, %v50_v15 }
  0xa2   :  { %v55_v13 = vmul.f32 %v544_v11, %v46_v9  ;;  %v61_v20 = vmax.f32 %v646_v18, 1e-08 }
  0xa4   :  { %v57_v17 = vsel %vm56_vm3, %v46_v9, %v55_v13  ;;  %545 = vrcp.f32 %v61_v20 }
  0xa5   :  { %v648_v19 = vsel %vm58_vm5, %v59_v16, %v57_v17 }
  0xa6   :  { %v62_v21 = vmax.f32 %v648_v19, 1e-08 }
  0xa8   :  { %547 = vrcp.f32 %v62_v21 }
  0xae   :  { %v546_v22 = vpop.eup %545 }
  0xb2   :  { %v548_v27 = vpop.eup %547 }
  0xde   :  { %v108_v23 = vpop.f32.mrb[0].mxu0 }
  0xdf   :  { %v115_v25 = vmul.f32 %v546_v22, %v108_v23  ;;  %v518_v26 = vpop.f32.mrb[1].mxu0 }
  0xe0   :  { %v111_v28 = vpop.f32.mrb[2].mxu0 }
  0xe1   :  { %v124_v30 = vmul.f32 %v504_v24, %v115_v25  ;;  %v116_v31 = vmul.f32 %v548_v27, %v111_v28  ;;  %v519_v32 = vpop.f32.mrb[3].mxu0 }
  0xe3   :  { %v125_v33 = vmul.f32 %v504_v24, %v116_v31  ;;  %v133_v34 = vadd.f32 %v505_v29, %v124_v30  ;;  %v194_v31 = vld [vmem:[#allocation2] sm:$0x1] }
  0xe5   :  { %v136_v35 = vsel %vm135_vm6, %v133_v34, -inf  ;;  %v134_v36 = vadd.f32 %v505_v29, %v125_v33 }
  0xe6   :  { %137 = vmax.xlane.f32.xlu1 %v136_v35 }
  0xe7   :  { %v139_v37 = vsel %vm135_vm6, %v134_v36, -inf }
  0xea   :  { %140 = vmax.xlane.f32.xlu1 %v139_v37 }
 0x173   :  { %v138_v40 = vpop.xlane.xlu1 %137 }
 0x174   :  { %vm144_vm7 = vcmp.ge.f32.partialorder %v133_v34, %v138_v40  ;;  %v326_v34 = vld [vmem:[#allocation4] sm:$0x1] }
 0x175   :  { %v146_v41 = vsel %vm144_vm7, %v143_v39, 16 }
 0x176   :  { %v148_v42 = vsel %vm135_vm6, %v146_v41, 2147483647 }
 0x177   :  { %v141_v43 = vpop.xlane.xlu1 %140  ;;  %v150_v44 = vshra.s32 %v148_v42, 16  ;;  %v149_v51 = vand.u32 65535, %v148_v42 }
 0x178   :  { %vm145_vm8 = vcmp.ge.f32.partialorder %v134_v36, %v141_v43 }
 0x179   :  { %v147_v45 = vsel %vm145_vm8, %v143_v39, 16  ;;  %v152_v46 = vcvt.s32.f32 %v150_v44  ;;  %v151_v53 = vcvt.s32.f32 %v149_v51  ;;  %v345_v51 = vld [vmem:[%s708_s3] sm:$0xff] }
 0x17a   :  { %v163_v47 = vsel %vm135_vm6, %v147_v45, 2147483647 }
 0x17b   :  { %153 = vmin.xlane.f32.xlu0 %v152_v46  ;;  %v165_v48 = vshra.s32 %v163_v47, 16  ;;  %v164_v54 = vand.u32 65535, %v163_v47 }
 0x17d   :  { %v167_v49 = vcvt.s32.f32 %v165_v48  ;;  %v166_v57 = vcvt.s32.f32 %v164_v54 }
 0x17f   :  { %168 = vmin.xlane.f32.xlu1 %v167_v49 }
 0x208   :  { %v154_v52 = vpop.xlane.xlu0 %153 }
 0x209   :  { %vm155_vm9 = vcmp.eq.f32.partialorder %v152_v46, %v154_v52  ;;  %v160_v61 = vcvt.f32.s32 %v154_v52  ;;  %v400_v46 = vld [vmem:[%s710_s5] sm:$0x1] }
 0x20a   :  { %v156_v55 = vsel %vm155_vm9, %v151_v53, inf }
 0x20b   :  { %157 = vmin.xlane.f32.xlu0 %v156_v55  ;;  %v161_v63 = vshll.u32 %v160_v61, 16 }
 0x20c   :  { %v169_v56 = vpop.xlane.xlu1 %168 }
 0x20d   :  { %vm170_vm10 = vcmp.eq.f32.partialorder %v167_v49, %v169_v56  ;;  %v175_v1 = vcvt.f32.s32 %v169_v56  ;;  %v346_v49 = vld [vmem:[%s708_s3 + $0x8] sm:$0xff]  ;;  %s589_s3 = smov [#allocation5]  }
 0x20e   :  { %v171_v58 = vsel %vm170_vm10, %v166_v57, inf  ;;  %s492_s5 = sshll.u32 %s589_s3, 4  ;;  %s493_s5 = int_to_ptr.vmem [resolvable:$true] %s492_s5 }
 0x20f   :  { %172 = vmin.xlane.f32.xlu1 %v171_v58  ;;  %v176_v5 = vshll.u32 %v175_v1, 16  ;;  %s561_s16 = scalar_lea.vmem %s493_s5, 256  ;;  %p566_p1 = scmp.lt.s32.totalorder %s493_s5, %s493_s5 }
 0x210   :  { %p562_p0 = scmp.ne.s32.totalorder %s493_s5, %s561_s16  ;;  %p567_p2 = scmp.lt.s32.totalorder %s561_s16, %s561_s16 }
 0x212   :  { %p568_p3 = por %p567_p2, %p566_p1 }
 0x214   :  { %p569_p4 = pnand %p568_p3, %p562_p0 }
 0x220   :  { %189 = vperm.xlu1 %539, %v40_v59  }
 0x221   :  { %184 = vperm.xlu0 %538, %v39_v60  }
 0x298   :  { %v158_v62 = vpop.xlane.xlu0 %157 }
 0x299   :  { %v159_v2 = vcvt.f32.s32 %v158_v62 }
 0x29b   :  { %v162_v3 = vadd.s32 %v161_v63, %v159_v2 }
 0x29c   :  { %v173_v4 = vpop.xlane.xlu1 %172 }
 0x29d   :  { %v174_v6 = vcvt.f32.s32 %v173_v4  ;;  %vm178_vm11 = vcmp.eq.s32.totalorder %v143_v39, %v162_v3 }
 0x29e   :  { %v180_v8 = vsel %vm178_vm11, 1.0, %v585_v0 }
 0x29f   :  { %v177_v7 = vadd.s32 %v176_v5, %v174_v6 }
 0x2a0   :  { %v185_v9 = vpop.permute.xlu0 %184  ;;  %v190_v10 = vpop.permute.xlu1 %189 }
 0x2a1   :  { %v192_v11 = vmul.f32 %v185_v9, %v180_v8  ;;  %vm179_vm12 = vcmp.eq.s32.totalorder %v143_v39, %v177_v7 }
 0x2a2   :  { %v181_v12 = vsel %vm179_vm12, 1.0, %v585_v0 }
 0x2a3   :  { %vm327_vm13 = vcmp.gt.f32.partialorder %v192_v11, 0.0  ;;  %v193_v13 = vmul.f32 %v190_v10, %v181_v12  ;;  %209 = vxpose.xlu1.b32.start [1/2] (short) (narrow) %v192_v11, 16  ;;  %v195_v15 = vsel %vm135_vm6, %v192_v11, 0.0 }
 0x2a4   :  { %v329_v14 = vsel %vm327_vm13, %v646_v18, -1e+30 }
 0x2a5   :  { %v196_v16 = vsel %vm135_vm6, %v193_v13, 0.0  ;;  %vm328_vm14 = vcmp.gt.f32.partialorder %v193_v13, 0.0  ;;  %v331_v21 = vsel %vm135_vm6, %v329_v14, -inf }
 0x2a6   :  { %v197_v17 = vadd.f32 %v196_v16, %v195_v15  ;;  %v330_v20 = vsel %vm328_vm14, %v648_v19, -1e+30 }
 0x2a7   :  { %v332_v22 = vsel %vm135_vm6, %v330_v20, -inf  ;;  %210 = vxpose.xlu1.b32.end [2/2] (short) (narrow) %v193_v13, 16 }
 0x2a8   :  { %v198_v23 = vrot.slane %v197_v17, 4  ;;  %v333_v0 = vmax.f32 %v331_v21, %v332_v22 }
 0x2aa   :  { %v199_v24 = vadd.f32 %v198_v23, %v197_v17  ;;  %v334_v25 = vrot.slane %v333_v0, 4 }
 0x2ac   :  { %v200_v26 = vrot.slane %v199_v24, 2  ;;  %v335_v27 = vmax.f32 %v333_v0, %v334_v25 }
 0x2ae   :  { %v201_v18 = vadd.f32 %v200_v26, %v199_v24  ;;  %v336_v28 = vrot.slane %v335_v27, 2 }
 0x2b0   :  { %v202_v29 = vrot.slane %v201_v18, 1  ;;  %v337_v30 = vmax.f32 %v335_v27, %v336_v28 }
 0x2b2   :  { %v203_v32 = vadd.f32 %v202_v29, %v201_v18  ;;  %v338_v33 = vrot.slane %v337_v30, 1 }
 0x2b4   :  { %v204_v19 = vadd.f32 %v203_v32, %v194_v31  ;;  %v339_v35 = vmax.f32 %v337_v30, %v338_v33 }
 0x2b6   :  { %206 = vst.msk [vmem:[#allocation2] sm:$0x1] %vm32_vm0, %v204_v19  ;;  %v340_v36 = vmax.f32 %v326_v34, %v339_v35 }
 0x2b8   :  { %341 = vst.msk [vmem:[#allocation4] sm:$0x1] %vm32_vm0, %v340_v36 }
 0x2bd   :  { %v347_v37 = vld [vmem:[#allocation2] sm:$0x1] }
 0x2be   :  { %348 = vxpose.xlu0.b32.start.end [1/1] (short) (narrow) %v347_v37, 16 }
 0x2bf   :  { %v401_v47 = vld [vmem:[#allocation4] sm:$0x1] }
 0x2c0   :  { %v402_v48 = vmax.f32 %v400_v46, %v401_v47 }
 0x323   :  { %v225_v38 = vpop.trf.xlu1 }
 0x324   :  { %524 = vmatprep.mubr.msk.f32.mxu1 %vm135_vm6, %v225_v38 }
 0x327   :  { %v226_v39 = vpop.trf.xlu1 }
 0x328   :  { %525 = vmatmul.mubr.msk.f32.vlgmr.msra.gmra.mrb[0].mxu1 %vm135_vm6, %v226_v39 }
 0x33e   :  { %v364_v40 = vpop.trf.xlu0 }
 0x33f   :  { %v384_v41 = vadd.f32 1.0, %v364_v40  ;;  %vm471_vm0 = vcmp.gt.f32.partialorder %v364_v40, 0.0 }
 0x340   :  { %v473_v2 = vsel %vm471_vm0, 1, %v588_v50 }
 0x341   :  { %549 = vrcp.f32 %v384_v41 }
 0x342   :  { %v365_v42 = vpop.trf.xlu0 }
 0x343   :  { %v385_v43 = vadd.f32 1.0, %v365_v42  ;;  %vm472_vm15 = vcmp.gt.f32.partialorder %v365_v42, 0.0 }
 0x344   :  { %v474_v62 = vsel %vm472_vm15, 1, %v588_v50 }
 0x345   :  { %551 = vrcp.f32 %v385_v43 }
 0x34b   :  { %v550_v44 = vpop.eup %549 }
 0x34c   :  { %390 = vperm.xlu1 %539, %v550_v44  }
 0x34f   :  { %v552_v45 = vpop.eup %551 }
 0x350   :  { %395 = vperm.xlu0 %538, %v552_v45  }
 0x375   :  { %403 = vxpose.xlu1.b32.start.end [1/1] (short) (narrow) %v402_v48, 16 }
 0x3cb   :  { %v391_v57 = vpop.permute.xlu1 %390 }
 0x3cf   :  { %v396_v55 = vpop.permute.xlu0 %395 }
 0x3f5   :  { %v419_v63 = vpop.trf.xlu1 }
 0x3f9   :  { %v420_v1 = vpop.trf.xlu1 }
 0x3fb   :  { %v526_v52 = vpop.f32.mrb[0].mxu1 }
 0x3fc   :  { %v383_v53 = vadd.f32 %v526_v52, %v346_v49  ;;  %v313_v54 = vpop.f32.mrb[1].mxu1 }
 0x3fd   :  { %v382_v56 = vadd.f32 %v345_v51, %v313_v54 }
 0x3fe   :  { %v399_v58 = vmul.f32 %v396_v55, %v383_v53 }
 0x3ff   :  { %v398_v59 = vmul.f32 %v391_v57, %v382_v56 }
 0x400   :  { %v436_v60 = vmul.f32 %v399_v58, %v399_v58 }
 0x401   :  { %v435_v61 = vmul.f32 %v398_v59, %v398_v59 }
 0x402   :  { %439 = vadd.xlane.f32.xlu1 %v436_v60 }
 0x403   :  { %437 = vadd.xlane.f32.xlu0 %v435_v61 }
 0x413   :  { %479 = vperm.xlu1 %539, %v474_v62  }
 0x419   :  { %461 = vperm.xlu0 %538, %v419_v63  }
 0x41d   :  { %466 = vperm.xlu0 %538, %v420_v1  }
 0x421   :  { %476 = vperm.xlu0 %538, %v473_v2  }
 0x48f   :  { %v440_v3 = vpop.xlane.xlu1 %439 }
 0x490   :  { %553 = vrsqrt.f32 %v440_v3  ;;  %v438_v4 = vpop.xlane.xlu0 %437  ;;  %vm450_vm1 = vcmp.eq.f32.partialorder %v440_v3, inf  ;;  %v453_v8 = vand.u32 2147483648, %v440_v3  ;;  %vm452_vm2 = vcmp.eq.f32.partialorder %v440_v3, 0.0 }
 0x491   :  { %555 = vrsqrt.f32 %v438_v4  ;;  %vm443_vm3 = vcmp.eq.f32.partialorder %v438_v4, inf  ;;  %v446_v11 = vand.u32 2147483648, %v438_v4  ;;  %vm445_vm4 = vcmp.eq.f32.partialorder %v438_v4, 0.0 }
 0x493   :  { %v480_v20 = vpop.permute.xlu1 %479 }
 0x494   :  { %vm482_vm5 = vcmp.eq.s32.totalorder %v480_v20, 1 }
 0x498   :  { %v462_v50 = vpop.permute.xlu0 %461 }
 0x49a   :  { %v554_v5 = vpop.eup %553 }
 0x49b   :  { %v556_v6 = vpop.eup %555  ;;  %v449_v7 = vmul.f32 %v554_v5, %v440_v3 }
 0x49c   :  { %v442_v9 = vmul.f32 %v556_v6, %v438_v4  ;;  %v467_v15 = vpop.permute.xlu0 %466 }
 0x49d   :  { %v451_v10 = vsel %vm450_vm1, %v440_v3, %v449_v7 }
 0x49e   :  { %v444_v12 = vsel %vm443_vm3, %v438_v4, %v442_v9  ;;  %v454_v13 = vsel %vm452_vm2, %v453_v8, %v451_v10 }
 0x49f   :  { %v447_v14 = vsel %vm445_vm4, %v446_v11, %v444_v12  ;;  %557 = vrcp.f32 %v454_v13 }
 0x4a0   :  { %559 = vrcp.f32 %v447_v14  ;;  %v477_v23 = vpop.permute.xlu0 %476 }
 0x4a1   :  { %vm481_vm6 = vcmp.eq.s32.totalorder %v477_v23, 1 }
 0x4a9   :  { %v558_v16 = vpop.eup %557 }
 0x4aa   :  { %v560_v17 = vpop.eup %559  ;;  %v458_v21 = vmul.f32 %v558_v16, %v399_v58 }
 0x4ab   :  { %v457_v22 = vmul.f32 %v560_v17, %v398_v59 }
 0x4ac   :  { %v470_v0 = vmul.f32 %v467_v15, %v458_v21 }
 0x4ad   :  { %v469_v24 = vmul.f32 %v462_v50, %v457_v22 }
 0x4ae   :  { %v484_v25 = vsel %vm482_vm5, %v470_v0, %v346_v49 }
 0x4af   :  { %486 = vst [vmem:[#allocation5 + $0x8] sm:$0xff] %v484_v25  ;;  %v483_v26 = vsel %vm481_vm6, %v469_v24, %v345_v51 }
 0x4b0   :  { %485 = vst [vmem:[#allocation5] sm:$0xff] %v483_v26 }
 0x4b1   :  { %572 = shalt.err (!%p569_p4)
}
 0x4b2   :  { %s573_s19 = scalar_lea.hbm %s712_s7, 256 }
 0x4b3   :  { %p574_p5 = scmp.ne.s32.totalorder %s712_s7, %s573_s19  ;;  %p577_p6 = scmp.lt.u32.totalorder %s573_s19, %s712_s7 }
 0x4b5   :  { %p579_p7 = pnand %p577_p6, %p574_p5 }
 0x4b7   :  { %582 = shalt.err (!%p579_p7)
}
 0x4b8   :  { %s590_s24 = smov 128   ;;  %s591_s25 = smov 8  }
 0x4b9   :  { %498 = dma.vmem_to_hbm [thread:$0]  %s493_s5, 256, %s712_s7, [#allocation6], %s590_s24, %s590_s24, %s591_s25  }
 0x4ba   :  { %583 = dma.done.wait [#allocation6], 256  }
 0x4bb   :  { %584 = vsyncadd [#allocation6], 4294967040 }
 0x4bc   :  { %502 = vsyncpa [#allocation6], 1 }

</bundles_post_ra>
